<compile_context>
chip_gen: v7x
topology: tpu7x:2x2x1
jax: 0.10.0
libtpu: 0.0.40
codegen_flags: <defaults>
</compile_context>

<pallas_src>
import functools

import jax
import jax.numpy as jnp
from jax.experimental import pallas as pl
from jax.experimental.pallas import tpu as pltpu

BN_EPS = 1e-5


def _silu(y):
    return y * jax.nn.sigmoid(y)


# ----------------------------------------------------------------------------
# Fully fused C3 kernel (one grid step = one batch element)
# ----------------------------------------------------------------------------
def _c3_kernel(*refs, n_bn, c1_, c2_, img_h, img_w, add):
    p = img_h * img_w
    pad = img_w + 1

    x_ref, w12_ref, b12_ref = refs[0], refs[1], refs[2]
    bn_refs = refs[3:3 + 4 * n_bn]
    w3a_ref, w3b_ref, b3_ref = refs[3 + 4 * n_bn:6 + 4 * n_bn]
    o_ref = refs[6 + 4 * n_bn]
    hp_ref = refs[7 + 4 * n_bn]                                # padded scratch

    # --- cv1 + cv2 as one matmul over the concatenated weights -------------
    x = x_ref[0]                                               # (c1, P)
    y12 = jnp.dot(w12_ref[...], x, preferred_element_type=jnp.float32)
    y12 = _silu(y12 + b12_ref[...])                            # (c1_+c2_, P)

    t = y12[:c1_, :]                                           # cv1 branch
    b2 = y12[c1_:c1_ + c2_, :]                                 # cv2 branch

    # Column index of each flattened-spatial position (for 3x3 edge masking).
    col = jax.lax.broadcasted_iota(jnp.int32, (1, p), 1) % img_w

    # --- Bottleneck chain ---------------------------------------------------
    for i in range(n_bn):
        w1_ref, b1_ref, w2_ref, b2b_ref = bn_refs[4 * i:4 * i + 4]
        c_hid = w1_ref.shape[0]
        c_out = w2_ref.shape[2]

        h = jnp.dot(w1_ref[...], t, preferred_element_type=jnp.float32)
        h = _silu(h + b1_ref[...])                             # (c_hid, P)

        # Zero-padded copy of h along the flattened spatial axis (only the
        # pad regions are zeroed; the middle is overwritten with h).
        zpad = jnp.zeros((c_hid, pad), jnp.float32)
        hp_ref[:c_hid, :pad] = zpad
        hp_ref[:c_hid, pad + p:] = zpad
        hp_ref[:c_hid, pad:pad + p] = h

        # 3x3 "same" conv as 9 shifted matmuls; row overflow reads the zero
        # pad, column wrap across image rows is masked.
        w2 = w2_ref[...]                                       # (3,3,Cout,Chid)
        acc = jnp.zeros((c_out, p), jnp.float32)
        for oy in (-1, 0, 1):
            for ox in (-1, 0, 1):
                d = oy * img_w + ox
                sh = hp_ref[:c_hid, pad + d:pad + d + p]       # (c_hid, P)
                if ox != 0:
                    valid = (col + ox >= 0) & (col + ox < img_w)
                    sh = jnp.where(valid, sh, 0.0)
                acc = acc + jnp.dot(w2[oy + 1, ox + 1], sh,
                                    preferred_element_type=jnp.float32)

        y = _silu(acc + b2b_ref[...])
        t = (t + y) if add else y

    # --- cv3 fused with the channel concat ----------------------------------
    out = jnp.dot(w3a_ref[...], t, preferred_element_type=jnp.float32)
    out = out + jnp.dot(w3b_ref[...], b2, preferred_element_type=jnp.float32)
    o_ref[0] = _silu(out + b3_ref[...]).astype(o_ref.dtype)


def c3_fused_call(x3, params, img_h, img_w, shortcut):
    """Whole C3 as a single pallas_call.  x3: (N, c1, H*W)."""
    n, c1, p = x3.shape
    assert p == img_h * img_w
    c1_ = params["cv1"]["w"].shape[0]
    c2_ = params["cv2"]["w"].shape[0]
    c_out3 = params["cv3"]["w"].shape[0]
    pad = img_w + 1

    w12 = jnp.concatenate([params["cv1"]["w"], params["cv2"]["w"]], axis=0)
    b12 = jnp.concatenate([params["cv1"]["b"], params["cv2"]["b"]], axis=0)
    w3 = params["cv3"]["w"]
    w3a = w3[:, :c1_]
    w3b = w3[:, c1_:c1_ + c2_]
    b3 = params["cv3"]["b"]

    inputs = [x3, w12, b12.reshape(-1, 1)]
    in_specs = [
        pl.BlockSpec((1, c1, p), lambda i: (i, 0, 0)),
        pl.BlockSpec(w12.shape, lambda i: (0, 0)),
        pl.BlockSpec((c1_ + c2_, 1), lambda i: (0, 0)),
    ]

    max_c_hid = 1
    for bp in params["m"]:
        c_hid = bp["w1"].shape[0]
        c_out = bp["w2"].shape[2]
        max_c_hid = max(max_c_hid, c_hid)
        inputs += [bp["w1"], bp["b1"].reshape(-1, 1),
                   bp["w2"], bp["b2"].reshape(-1, 1)]
        in_specs += [
            pl.BlockSpec(bp["w1"].shape, lambda i: (0, 0)),
            pl.BlockSpec((c_hid, 1), lambda i: (0, 0)),
            pl.BlockSpec(bp["w2"].shape, lambda i: (0, 0, 0, 0)),
            pl.BlockSpec((c_out, 1), lambda i: (0, 0)),
        ]

    inputs += [w3a, w3b, b3.reshape(-1, 1)]
    in_specs += [
        pl.BlockSpec(w3a.shape, lambda i: (0, 0)),
        pl.BlockSpec(w3b.shape, lambda i: (0, 0)),
        pl.BlockSpec((c_out3, 1), lambda i: (0, 0)),
    ]

    kernel = functools.partial(
        _c3_kernel, n_bn=len(params["m"]), c1_=c1_, c2_=c2_,
        img_h=img_h, img_w=img_w, add=shortcut)

    return pl.pallas_call(
        kernel,
        out_shape=jax.ShapeDtypeStruct((n, c_out3, p), x3.dtype),
        grid=(n,),
        in_specs=in_specs,
        out_specs=pl.BlockSpec((1, c_out3, p), lambda i: (i, 0, 0)),
        scratch_shapes=[pltpu.VMEM((max_c_hid, p + 2 * pad), jnp.float32)],
        compiler_params=pltpu.CompilerParams(
            dimension_semantics=("parallel",)),
    )(*inputs)


# ----------------------------------------------------------------------------
# Deterministic parameters (Conv2d weight + BatchNorm folded INTO the weight)
# ----------------------------------------------------------------------------
def _fold_bn(gamma, beta, mean, var, eps=BN_EPS):
    scale = gamma / jnp.sqrt(var + eps)
    bias = beta - mean * scale
    return scale, bias


def _make_conv_params(key, c_in, c_out, k):
    kw, kg, kb, km, kv = jax.random.split(key, 5)
    gamma = 1.0 + 0.1 * jax.random.normal(kg, (c_out,), jnp.float32)
    beta = 0.1 * jax.random.normal(kb, (c_out,), jnp.float32)
    mean = 0.1 * jax.random.normal(km, (c_out,), jnp.float32)
    var = 1.0 + jnp.abs(jax.random.normal(kv, (c_out,), jnp.float32))
    scale, bias = _fold_bn(gamma, beta, mean, var)
    if k == 1:
        w = 0.1 * jax.random.normal(kw, (c_out, c_in), jnp.float32)
        w = w * scale[:, None]                     # BN scale folded into weights
    else:
        w = 0.1 * jax.random.normal(kw, (k, k, c_out, c_in), jnp.float32)
        w = w * scale[None, None, :, None]
    return dict(w=w, b=bias)


def make_c3_params(key, c1, c2, c2o, n=1, e=(0.5, 0.5), rate=None):
    if rate is None:
        rate = [1.0] * 12
    c1_ = int(c2o * e[0])
    c2_ = int(c2o * e[1])
    keys = jax.random.split(key, 3 + 2 * n)
    params = {
        "cv1": _make_conv_params(keys[0], c1, c1_, 1),
        "cv2": _make_conv_params(keys[1], c1, c2_, 1),
        "cv3": _make_conv_params(keys[2], c1_ + c2_, c2, 1),
        "m": [],
    }
    for i in range(n):
        c_ = int(c1_ * rate[i])
        p1 = _make_conv_params(keys[3 + 2 * i], c1_, c_, 1)
        p2 = _make_conv_params(keys[4 + 2 * i], c_, c1_, 3)
        params["m"].append({"w1": p1["w"], "b1": p1["b"],
                            "w2": p2["w"], "b2": p2["b"]})
    return params


# ----------------------------------------------------------------------------
# C3 forward:  cv3( cat( m(cv1(x)), cv2(x) ) )
# ----------------------------------------------------------------------------
@functools.partial(jax.jit, static_argnames=("shortcut",))
def c3_forward(x_nchw, params, shortcut=True):
    n, c1, hh, ww = x_nchw.shape
    x3 = x_nchw.reshape(n, c1, hh * ww)           # channel-first, spatial->lanes
    out = c3_fused_call(x3, params, hh, ww, shortcut)
    return out.reshape(n, -1, hh, ww)


# ----------------------------------------------------------------------------
# Pure-JAX reference (same folded parameters) for a correctness check
# ----------------------------------------------------------------------------
def _ref_forward(x, params, shortcut=True):
    prec = jax.lax.Precision.HIGHEST

    def pw(xx, w, b):
        y = jnp.einsum("oc,nchw->nohw", w, xx, precision=prec)
        return jax.nn.silu(y + b[None, :, None, None])

    def conv3(xx, w, b):
        wt = jnp.transpose(w, (2, 3, 0, 1))       # (kh,kw,O,I) -> (O,I,kh,kw)
        y = jax.lax.conv_general_dilated(
            xx, wt, window_strides=(1, 1), padding=((1, 1), (1, 1)),
            dimension_numbers=("NCHW", "OIHW", "NCHW"), precision=prec)
        return jax.nn.silu(y + b[None, :, None, None])

    t = pw(x, params["cv1"]["w"], params["cv1"]["b"])
    b2 = pw(x, params["cv2"]["w"], params["cv2"]["b"])
    for bp in params["m"]:
        h = pw(t, bp["w1"], bp["b1"])
        y = conv3(h, bp["w2"], bp["b2"])
        t = t + y if shortcut else y
    cat = jnp.concatenate([t, b2], axis=1)
    return pw(cat, params["cv3"]["w"], params["cv3"]["b"])


if __name__ == "__main__":
    # C3(c1=16, c2=32, c2o=32, n=1, shortcut=True, e=[0.5, 0.5])
    c1, c2, c2o, n_bn = 16, 32, 32, 1
    key = jax.random.PRNGKey(0)
    kx, kp = jax.random.split(key)

    x = jax.random.normal(kx, (2, c1, 16, 16), jnp.float32)  # NCHW like PyTorch
    params = make_c3_params(kp, c1, c2, c2o, n=n_bn)

    out = c3_forward(x, params)
    jax.block_until_ready(out)
    assert out.shape == (2, c2, 16, 16), out.shape

    ref = _ref_forward(x, params)
    err = float(jnp.max(jnp.abs(out - ref)))
    assert err < 5e-2, f"max abs error vs reference: {err}"

    print("KERNEL_OK")
</pallas_src>

<mosaic_0001>
module attributes {stable_mosaic.version = 11 : i64} {
  func.func @_c3_kernel(%arg0: i32, %arg1: memref<1x16x256xf32, #tpu.memory_space<vmem>>, %arg2: memref<32x16xf32, #tpu.memory_space<vmem>>, %arg3: memref<32x1xf32, #tpu.memory_space<vmem>>, %arg4: memref<16x16xf32, #tpu.memory_space<vmem>>, %arg5: memref<16x1xf32, #tpu.memory_space<vmem>>, %arg6: memref<3x3x16x16xf32, #tpu.memory_space<vmem>>, %arg7: memref<16x1xf32, #tpu.memory_space<vmem>>, %arg8: memref<32x16xf32, #tpu.memory_space<vmem>>, %arg9: memref<32x16xf32, #tpu.memory_space<vmem>>, %arg10: memref<32x1xf32, #tpu.memory_space<vmem>>, %arg11: memref<1x32x256xf32, #tpu.memory_space<vmem>>, %arg12: memref<16x290xf32, #tpu.memory_space<vmem>>) attributes {dimension_semantics = [#tpu.dimension_semantics<parallel>], iteration_bounds = array<i64: 2>, scalar_prefetch = 0 : i64, scratch_operands = 1 : i64, tpu.core_type = #tpu.core_type<tc>, window_params = [{transform_indices = @transform_0, window_bounds = array<i64: 1, 16, 256>}, {pipeline_mode = #tpu.pipeline_mode<synchronous>, transform_indices = @transform_1, window_bounds = array<i64: 32, 16>}, {pipeline_mode = #tpu.pipeline_mode<synchronous>, transform_indices = @transform_2, window_bounds = array<i64: 32, 1>}, {pipeline_mode = #tpu.pipeline_mode<synchronous>, transform_indices = @transform_3, window_bounds = array<i64: 16, 16>}, {pipeline_mode = #tpu.pipeline_mode<synchronous>, transform_indices = @transform_4, window_bounds = array<i64: 16, 1>}, {pipeline_mode = #tpu.pipeline_mode<synchronous>, transform_indices = @transform_5, window_bounds = array<i64: 3, 3, 16, 16>}, {pipeline_mode = #tpu.pipeline_mode<synchronous>, transform_indices = @transform_6, window_bounds = array<i64: 16, 1>}, {pipeline_mode = #tpu.pipeline_mode<synchronous>, transform_indices = @transform_7, window_bounds = array<i64: 32, 16>}, {pipeline_mode = #tpu.pipeline_mode<synchronous>, transform_indices = @transform_8, window_bounds = array<i64: 32, 16>}, {pipeline_mode = #tpu.pipeline_mode<synchronous>, transform_indices = @transform_9, window_bounds = array<i64: 32, 1>}, {transform_indices = @transform_10, window_bounds = array<i64: 1, 32, 256>}]} {
    %c0 = arith.constant 0 : index
    %c0_0 = arith.constant 0 : index
    %c0_1 = arith.constant 0 : index
    %0 = vector.load %arg1[%c0, %c0_0, %c0_1] : memref<1x16x256xf32, #tpu.memory_space<vmem>>, vector<1x16x256xf32>
    %1 = vector.shape_cast %0 : vector<1x16x256xf32> to vector<16x256xf32>
    %c0_2 = arith.constant 0 : index
    %c0_3 = arith.constant 0 : index
    %2 = vector.load %arg2[%c0_2, %c0_3] : memref<32x16xf32, #tpu.memory_space<vmem>>, vector<32x16xf32>
    %cst = arith.constant dense<0.000000e+00> : vector<32x256xf32>
    %3 = tpu.matmul %2, %1, %cst {dimension_numbers = #tpu.dot_dimension_numbers<[1], [0], [0], [1], [0, 0, 1, 1], [], []>} : vector<32x16xf32>, vector<16x256xf32>, vector<32x256xf32> -> vector<32x256xf32>
    %c0_4 = arith.constant 0 : index
    %c0_5 = arith.constant 0 : index
    %4 = vector.load %arg3[%c0_4, %c0_5] : memref<32x1xf32, #tpu.memory_space<vmem>>, vector<32x1xf32>
    %5 = vector.broadcast %4 : vector<32x1xf32> to vector<32x256xf32>
    %6 = arith.addf %3, %5 : vector<32x256xf32>
    %7 = arith.negf %6 : vector<32x256xf32>
    %8 = math.exp %7 : vector<32x256xf32>
    %cst_6 = arith.constant 1.000000e+00 : f32
    %9 = vector.broadcast %cst_6 : f32 to vector<32x256xf32>
    %10 = arith.addf %9, %8 : vector<32x256xf32>
    %11 = arith.divf %9, %10 : vector<32x256xf32>
    %12 = arith.mulf %6, %11 : vector<32x256xf32>
    %13 = vector.extract_strided_slice %12 {offsets = [0, 0], sizes = [16, 256], strides = [1, 1]} : vector<32x256xf32> to vector<16x256xf32>
    %14 = vector.extract_strided_slice %12 {offsets = [16, 0], sizes = [16, 256], strides = [1, 1]} : vector<32x256xf32> to vector<16x256xf32>
    %15 = tpu.iota {dimensions = array<i32: 1>} : vector<1x256xi32>
    %c16_i32 = arith.constant 16 : i32
    %c0_i32 = arith.constant 0 : i32
    %16 = arith.cmpi eq, %c16_i32, %c0_i32 : i32
    %c1_i32 = arith.constant 1 : i32
    %17 = arith.select %16, %c1_i32, %c16_i32 : i32
    %18 = vector.broadcast %17 : i32 to vector<1x256xi32>
    %19 = arith.remsi %15, %18 : vector<1x256xi32>
    %c0_i32_7 = arith.constant 0 : i32
    %20 = vector.broadcast %c0_i32_7 : i32 to vector<1x256xi32>
    %21 = arith.cmpi ne, %19, %20 : vector<1x256xi32>
    %c0_i32_8 = arith.constant 0 : i32
    %22 = vector.broadcast %c0_i32_8 : i32 to vector<1x256xi32>
    %23 = arith.cmpi slt, %19, %22 : vector<1x256xi32>
    %c0_i32_9 = arith.constant 0 : i32
    %24 = arith.cmpi slt, %17, %c0_i32_9 : i32
    %25 = vector.broadcast %24 : i1 to vector<1x256xi1>
    %26 = vector.broadcast %25 : vector<1x256xi1> to vector<1x256xi1>
    %27 = arith.xori %23, %26 : vector<1x256xi1>
    %28 = arith.andi %27, %21 : vector<1x256xi1>
    %29 = vector.broadcast %17 : i32 to vector<1x256xi32>
    %30 = arith.addi %19, %29 : vector<1x256xi32>
    %31 = arith.select %28, %30, %19 : vector<1x256xi1>, vector<1x256xi32>
    %c0_10 = arith.constant 0 : index
    %c0_11 = arith.constant 0 : index
    %32 = vector.load %arg4[%c0_10, %c0_11] : memref<16x16xf32, #tpu.memory_space<vmem>>, vector<16x16xf32>
    %cst_12 = arith.constant dense<0.000000e+00> : vector<16x256xf32>
    %33 = tpu.matmul %32, %13, %cst_12 {dimension_numbers = #tpu.dot_dimension_numbers<[1], [0], [0], [1], [0, 0, 1, 1], [], []>} : vector<16x16xf32>, vector<16x256xf32>, vector<16x256xf32> -> vector<16x256xf32>
    %c0_13 = arith.constant 0 : index
    %c0_14 = arith.constant 0 : index
    %34 = vector.load %arg5[%c0_13, %c0_14] : memref<16x1xf32, #tpu.memory_space<vmem>>, vector<16x1xf32>
    %35 = vector.broadcast %34 : vector<16x1xf32> to vector<16x256xf32>
    %36 = arith.addf %33, %35 : vector<16x256xf32>
    %37 = arith.negf %36 : vector<16x256xf32>
    %38 = math.exp %37 : vector<16x256xf32>
    %cst_15 = arith.constant 1.000000e+00 : f32
    %39 = vector.broadcast %cst_15 : f32 to vector<16x256xf32>
    %40 = arith.addf %39, %38 : vector<16x256xf32>
    %41 = arith.divf %39, %40 : vector<16x256xf32>
    %42 = arith.mulf %36, %41 : vector<16x256xf32>
    %cst_16 = arith.constant 0.000000e+00 : f32
    %43 = vector.broadcast %cst_16 : f32 to vector<16x17xf32>
    %c0_17 = arith.constant 0 : index
    %c0_18 = arith.constant 0 : index
    %44 = vector.load %arg12[%c0_17, %c0_18] : memref<16x290xf32, #tpu.memory_space<vmem>>, vector<16x17xf32>
    tpu.vector_store %arg12[%c0_17, %c0_18], %43 {strides = array<i32>} : memref<16x290xf32, #tpu.memory_space<vmem>>, vector<16x17xf32>,
    %c0_19 = arith.constant 0 : index
    %c273 = arith.constant 273 : index
    %45 = vector.load %arg12[%c0_19, %c273] : memref<16x290xf32, #tpu.memory_space<vmem>>, vector<16x17xf32>
    tpu.vector_store %arg12[%c0_19, %c273], %43 {strides = array<i32>} : memref<16x290xf32, #tpu.memory_space<vmem>>, vector<16x17xf32>,
    %c0_20 = arith.constant 0 : index
    %c17 = arith.constant 17 : index
    %46 = vector.load %arg12[%c0_20, %c17] : memref<16x290xf32, #tpu.memory_space<vmem>>, vector<16x256xf32>
    tpu.vector_store %arg12[%c0_20, %c17], %42 {strides = array<i32>} : memref<16x290xf32, #tpu.memory_space<vmem>>, vector<16x256xf32>,
    %c0_21 = arith.constant 0 : index
    %c0_22 = arith.constant 0 : index
    %c0_23 = arith.constant 0 : index
    %c0_24 = arith.constant 0 : index
    %47 = vector.load %arg6[%c0_21, %c0_22, %c0_23, %c0_24] : memref<3x3x16x16xf32, #tpu.memory_space<vmem>>, vector<3x3x16x16xf32>
    %cst_25 = arith.constant 0.000000e+00 : f32
    %48 = vector.broadcast %cst_25 : f32 to vector<16x256xf32>
    %c0_26 = arith.constant 0 : index
    %c0_27 = arith.constant 0 : index
    %49 = vector.load %arg12[%c0_26, %c0_27] : memref<16x290xf32, #tpu.memory_space<vmem>>, vector<16x256xf32>
    %c-1_i32 = arith.constant -1 : i32
    %50 = vector.broadcast %c-1_i32 : i32 to vector<1x256xi32>
    %51 = arith.addi %31, %50 : vector<1x256xi32>
    %c0_i32_28 = arith.constant 0 : i32
    %52 = vector.broadcast %c0_i32_28 : i32 to vector<1x256xi32>
    %53 = arith.cmpi sge, %51, %52 : vector<1x256xi32>
    %c-1_i32_29 = arith.constant -1 : i32
    %54 = vector.broadcast %c-1_i32_29 : i32 to vector<1x256xi32>
    %55 = arith.addi %31, %54 : vector<1x256xi32>
    %c16_i32_30 = arith.constant 16 : i32
    %56 = vector.broadcast %c16_i32_30 : i32 to vector<1x256xi32>
    %57 = arith.cmpi slt, %55, %56 : vector<1x256xi32>
    %58 = arith.andi %53, %57 : vector<1x256xi1>
    %cst_31 = arith.constant 0.000000e+00 : f32
    %59 = vector.shape_cast %58 : vector<1x256xi1> to vector<1x256xi1>
    %60 = vector.broadcast %59 : vector<1x256xi1> to vector<16x256xi1>
    %61 = vector.broadcast %cst_31 : f32 to vector<16x256xf32>
    %62 = arith.select %60, %49, %61 : vector<16x256xi1>, vector<16x256xf32>
    %63 = vector.extract_strided_slice %47 {offsets = [0, 0, 0, 0], sizes = [1, 1, 16, 16], strides = [1, 1, 1, 1]} : vector<3x3x16x16xf32> to vector<1x1x16x16xf32>
    %64 = vector.shape_cast %63 : vector<1x1x16x16xf32> to vector<16x16xf32>
    %cst_32 = arith.constant dense<0.000000e+00> : vector<16x256xf32>
    %65 = tpu.matmul %64, %62, %cst_32 {dimension_numbers = #tpu.dot_dimension_numbers<[1], [0], [0], [1], [0, 0, 1, 1], [], []>} : vector<16x16xf32>, vector<16x256xf32>, vector<16x256xf32> -> vector<16x256xf32>
    %66 = arith.addf %48, %65 : vector<16x256xf32>
    %c0_33 = arith.constant 0 : index
    %c1 = arith.constant 1 : index
    %67 = vector.load %arg12[%c0_33, %c1] : memref<16x290xf32, #tpu.memory_space<vmem>>, vector<16x256xf32>
    %68 = vector.extract_strided_slice %47 {offsets = [0, 1, 0, 0], sizes = [1, 1, 16, 16], strides = [1, 1, 1, 1]} : vector<3x3x16x16xf32> to vector<1x1x16x16xf32>
    %69 = vector.shape_cast %68 : vector<1x1x16x16xf32> to vector<16x16xf32>
    %cst_34 = arith.constant dense<0.000000e+00> : vector<16x256xf32>
    %70 = tpu.matmul %69, %67, %cst_34 {dimension_numbers = #tpu.dot_dimension_numbers<[1], [0], [0], [1], [0, 0, 1, 1], [], []>} : vector<16x16xf32>, vector<16x256xf32>, vector<16x256xf32> -> vector<16x256xf32>
    %71 = arith.addf %66, %70 : vector<16x256xf32>
    %c0_35 = arith.constant 0 : index
    %c2 = arith.constant 2 : index
    %72 = vector.load %arg12[%c0_35, %c2] : memref<16x290xf32, #tpu.memory_space<vmem>>, vector<16x256xf32>
    %c1_i32_36 = arith.constant 1 : i32
    %73 = vector.broadcast %c1_i32_36 : i32 to vector<1x256xi32>
    %74 = arith.addi %31, %73 : vector<1x256xi32>
    %c0_i32_37 = arith.constant 0 : i32
    %75 = vector.broadcast %c0_i32_37 : i32 to vector<1x256xi32>
    %76 = arith.cmpi sge, %74, %75 : vector<1x256xi32>
    %c1_i32_38 = arith.constant 1 : i32
    %77 = vector.broadcast %c1_i32_38 : i32 to vector<1x256xi32>
    %78 = arith.addi %31, %77 : vector<1x256xi32>
    %c16_i32_39 = arith.constant 16 : i32
    %79 = vector.broadcast %c16_i32_39 : i32 to vector<1x256xi32>
    %80 = arith.cmpi slt, %78, %79 : vector<1x256xi32>
    %81 = arith.andi %76, %80 : vector<1x256xi1>
    %cst_40 = arith.constant 0.000000e+00 : f32
    %82 = vector.shape_cast %81 : vector<1x256xi1> to vector<1x256xi1>
    %83 = vector.broadcast %82 : vector<1x256xi1> to vector<16x256xi1>
    %84 = vector.broadcast %cst_40 : f32 to vector<16x256xf32>
    %85 = arith.select %83, %72, %84 : vector<16x256xi1>, vector<16x256xf32>
    %86 = vector.extract_strided_slice %47 {offsets = [0, 2, 0, 0], sizes = [1, 1, 16, 16], strides = [1, 1, 1, 1]} : vector<3x3x16x16xf32> to vector<1x1x16x16xf32>
    %87 = vector.shape_cast %86 : vector<1x1x16x16xf32> to vector<16x16xf32>
    %cst_41 = arith.constant dense<0.000000e+00> : vector<16x256xf32>
    %88 = tpu.matmul %87, %85, %cst_41 {dimension_numbers = #tpu.dot_dimension_numbers<[1], [0], [0], [1], [0, 0, 1, 1], [], []>} : vector<16x16xf32>, vector<16x256xf32>, vector<16x256xf32> -> vector<16x256xf32>
    %89 = arith.addf %71, %88 : vector<16x256xf32>
    %c0_42 = arith.constant 0 : index
    %c16 = arith.constant 16 : index
    %90 = vector.load %arg12[%c0_42, %c16] : memref<16x290xf32, #tpu.memory_space<vmem>>, vector<16x256xf32>
    %c-1_i32_43 = arith.constant -1 : i32
    %91 = vector.broadcast %c-1_i32_43 : i32 to vector<1x256xi32>
    %92 = arith.addi %31, %91 : vector<1x256xi32>
    %c0_i32_44 = arith.constant 0 : i32
    %93 = vector.broadcast %c0_i32_44 : i32 to vector<1x256xi32>
    %94 = arith.cmpi sge, %92, %93 : vector<1x256xi32>
    %c-1_i32_45 = arith.constant -1 : i32
    %95 = vector.broadcast %c-1_i32_45 : i32 to vector<1x256xi32>
    %96 = arith.addi %31, %95 : vector<1x256xi32>
    %c16_i32_46 = arith.constant 16 : i32
    %97 = vector.broadcast %c16_i32_46 : i32 to vector<1x256xi32>
    %98 = arith.cmpi slt, %96, %97 : vector<1x256xi32>
    %99 = arith.andi %94, %98 : vector<1x256xi1>
    %cst_47 = arith.constant 0.000000e+00 : f32
    %100 = vector.shape_cast %99 : vector<1x256xi1> to vector<1x256xi1>
    %101 = vector.broadcast %100 : vector<1x256xi1> to vector<16x256xi1>
    %102 = vector.broadcast %cst_47 : f32 to vector<16x256xf32>
    %103 = arith.select %101, %90, %102 : vector<16x256xi1>, vector<16x256xf32>
    %104 = vector.extract_strided_slice %47 {offsets = [1, 0, 0, 0], sizes = [1, 1, 16, 16], strides = [1, 1, 1, 1]} : vector<3x3x16x16xf32> to vector<1x1x16x16xf32>
    %105 = vector.shape_cast %104 : vector<1x1x16x16xf32> to vector<16x16xf32>
    %cst_48 = arith.constant dense<0.000000e+00> : vector<16x256xf32>
    %106 = tpu.matmul %105, %103, %cst_48 {dimension_numbers = #tpu.dot_dimension_numbers<[1], [0], [0], [1], [0, 0, 1, 1], [], []>} : vector<16x16xf32>, vector<16x256xf32>, vector<16x256xf32> -> vector<16x256xf32>
    %107 = arith.addf %89, %106 : vector<16x256xf32>
    %c0_49 = arith.constant 0 : index
    %c17_50 = arith.constant 17 : index
    %108 = vector.load %arg12[%c0_49, %c17_50] : memref<16x290xf32, #tpu.memory_space<vmem>>, vector<16x256xf32>
    %109 = vector.extract_strided_slice %47 {offsets = [1, 1, 0, 0], sizes = [1, 1, 16, 16], strides = [1, 1, 1, 1]} : vector<3x3x16x16xf32> to vector<1x1x16x16xf32>
    %110 = vector.shape_cast %109 : vector<1x1x16x16xf32> to vector<16x16xf32>
    %cst_51 = arith.constant dense<0.000000e+00> : vector<16x256xf32>
    %111 = tpu.matmul %110, %108, %cst_51 {dimension_numbers = #tpu.dot_dimension_numbers<[1], [0], [0], [1], [0, 0, 1, 1], [], []>} : vector<16x16xf32>, vector<16x256xf32>, vector<16x256xf32> -> vector<16x256xf32>
    %112 = arith.addf %107, %111 : vector<16x256xf32>
    %c0_52 = arith.constant 0 : index
    %c18 = arith.constant 18 : index
    %113 = vector.load %arg12[%c0_52, %c18] : memref<16x290xf32, #tpu.memory_space<vmem>>, vector<16x256xf32>
    %c1_i32_53 = arith.constant 1 : i32
    %114 = vector.broadcast %c1_i32_53 : i32 to vector<1x256xi32>
    %115 = arith.addi %31, %114 : vector<1x256xi32>
    %c0_i32_54 = arith.constant 0 : i32
    %116 = vector.broadcast %c0_i32_54 : i32 to vector<1x256xi32>
    %117 = arith.cmpi sge, %115, %116 : vector<1x256xi32>
    %c1_i32_55 = arith.constant 1 : i32
    %118 = vector.broadcast %c1_i32_55 : i32 to vector<1x256xi32>
    %119 = arith.addi %31, %118 : vector<1x256xi32>
    %c16_i32_56 = arith.constant 16 : i32
    %120 = vector.broadcast %c16_i32_56 : i32 to vector<1x256xi32>
    %121 = arith.cmpi slt, %119, %120 : vector<1x256xi32>
    %122 = arith.andi %117, %121 : vector<1x256xi1>
    %cst_57 = arith.constant 0.000000e+00 : f32
    %123 = vector.shape_cast %122 : vector<1x256xi1> to vector<1x256xi1>
    %124 = vector.broadcast %123 : vector<1x256xi1> to vector<16x256xi1>
    %125 = vector.broadcast %cst_57 : f32 to vector<16x256xf32>
    %126 = arith.select %124, %113, %125 : vector<16x256xi1>, vector<16x256xf32>
    %127 = vector.extract_strided_slice %47 {offsets = [1, 2, 0, 0], sizes = [1, 1, 16, 16], strides = [1, 1, 1, 1]} : vector<3x3x16x16xf32> to vector<1x1x16x16xf32>
    %128 = vector.shape_cast %127 : vector<1x1x16x16xf32> to vector<16x16xf32>
    %cst_58 = arith.constant dense<0.000000e+00> : vector<16x256xf32>
    %129 = tpu.matmul %128, %126, %cst_58 {dimension_numbers = #tpu.dot_dimension_numbers<[1], [0], [0], [1], [0, 0, 1, 1], [], []>} : vector<16x16xf32>, vector<16x256xf32>, vector<16x256xf32> -> vector<16x256xf32>
    %130 = arith.addf %112, %129 : vector<16x256xf32>
    %c0_59 = arith.constant 0 : index
    %c32 = arith.constant 32 : index
    %131 = vector.load %arg12[%c0_59, %c32] : memref<16x290xf32, #tpu.memory_space<vmem>>, vector<16x256xf32>
    %c-1_i32_60 = arith.constant -1 : i32
    %132 = vector.broadcast %c-1_i32_60 : i32 to vector<1x256xi32>
    %133 = arith.addi %31, %132 : vector<1x256xi32>
    %c0_i32_61 = arith.constant 0 : i32
    %134 = vector.broadcast %c0_i32_61 : i32 to vector<1x256xi32>
    %135 = arith.cmpi sge, %133, %134 : vector<1x256xi32>
    %c-1_i32_62 = arith.constant -1 : i32
    %136 = vector.broadcast %c-1_i32_62 : i32 to vector<1x256xi32>
    %137 = arith.addi %31, %136 : vector<1x256xi32>
    %c16_i32_63 = arith.constant 16 : i32
    %138 = vector.broadcast %c16_i32_63 : i32 to vector<1x256xi32>
    %139 = arith.cmpi slt, %137, %138 : vector<1x256xi32>
    %140 = arith.andi %135, %139 : vector<1x256xi1>
    %cst_64 = arith.constant 0.000000e+00 : f32
    %141 = vector.shape_cast %140 : vector<1x256xi1> to vector<1x256xi1>
    %142 = vector.broadcast %141 : vector<1x256xi1> to vector<16x256xi1>
    %143 = vector.broadcast %cst_64 : f32 to vector<16x256xf32>
    %144 = arith.select %142, %131, %143 : vector<16x256xi1>, vector<16x256xf32>
    %145 = vector.extract_strided_slice %47 {offsets = [2, 0, 0, 0], sizes = [1, 1, 16, 16], strides = [1, 1, 1, 1]} : vector<3x3x16x16xf32> to vector<1x1x16x16xf32>
    %146 = vector.shape_cast %145 : vector<1x1x16x16xf32> to vector<16x16xf32>
    %cst_65 = arith.constant dense<0.000000e+00> : vector<16x256xf32>
    %147 = tpu.matmul %146, %144, %cst_65 {dimension_numbers = #tpu.dot_dimension_numbers<[1], [0], [0], [1], [0, 0, 1, 1], [], []>} : vector<16x16xf32>, vector<16x256xf32>, vector<16x256xf32> -> vector<16x256xf32>
    %148 = arith.addf %130, %147 : vector<16x256xf32>
    %c0_66 = arith.constant 0 : index
    %c33 = arith.constant 33 : index
    %149 = vector.load %arg12[%c0_66, %c33] : memref<16x290xf32, #tpu.memory_space<vmem>>, vector<16x256xf32>
    %150 = vector.extract_strided_slice %47 {offsets = [2, 1, 0, 0], sizes = [1, 1, 16, 16], strides = [1, 1, 1, 1]} : vector<3x3x16x16xf32> to vector<1x1x16x16xf32>
    %151 = vector.shape_cast %150 : vector<1x1x16x16xf32> to vector<16x16xf32>
    %cst_67 = arith.constant dense<0.000000e+00> : vector<16x256xf32>
    %152 = tpu.matmul %151, %149, %cst_67 {dimension_numbers = #tpu.dot_dimension_numbers<[1], [0], [0], [1], [0, 0, 1, 1], [], []>} : vector<16x16xf32>, vector<16x256xf32>, vector<16x256xf32> -> vector<16x256xf32>
    %153 = arith.addf %148, %152 : vector<16x256xf32>
    %c0_68 = arith.constant 0 : index
    %c34 = arith.constant 34 : index
    %154 = vector.load %arg12[%c0_68, %c34] : memref<16x290xf32, #tpu.memory_space<vmem>>, vector<16x256xf32>
    %c1_i32_69 = arith.constant 1 : i32
    %155 = vector.broadcast %c1_i32_69 : i32 to vector<1x256xi32>
    %156 = arith.addi %31, %155 : vector<1x256xi32>
    %c0_i32_70 = arith.constant 0 : i32
    %157 = vector.broadcast %c0_i32_70 : i32 to vector<1x256xi32>
    %158 = arith.cmpi sge, %156, %157 : vector<1x256xi32>
    %c1_i32_71 = arith.constant 1 : i32
    %159 = vector.broadcast %c1_i32_71 : i32 to vector<1x256xi32>
    %160 = arith.addi %31, %159 : vector<1x256xi32>
    %c16_i32_72 = arith.constant 16 : i32
    %161 = vector.broadcast %c16_i32_72 : i32 to vector<1x256xi32>
    %162 = arith.cmpi slt, %160, %161 : vector<1x256xi32>
    %163 = arith.andi %158, %162 : vector<1x256xi1>
    %cst_73 = arith.constant 0.000000e+00 : f32
    %164 = vector.shape_cast %163 : vector<1x256xi1> to vector<1x256xi1>
    %165 = vector.broadcast %164 : vector<1x256xi1> to vector<16x256xi1>
    %166 = vector.broadcast %cst_73 : f32 to vector<16x256xf32>
    %167 = arith.select %165, %154, %166 : vector<16x256xi1>, vector<16x256xf32>
    %168 = vector.extract_strided_slice %47 {offsets = [2, 2, 0, 0], sizes = [1, 1, 16, 16], strides = [1, 1, 1, 1]} : vector<3x3x16x16xf32> to vector<1x1x16x16xf32>
    %169 = vector.shape_cast %168 : vector<1x1x16x16xf32> to vector<16x16xf32>
    %cst_74 = arith.constant dense<0.000000e+00> : vector<16x256xf32>
    %170 = tpu.matmul %169, %167, %cst_74 {dimension_numbers = #tpu.dot_dimension_numbers<[1], [0], [0], [1], [0, 0, 1, 1], [], []>} : vector<16x16xf32>, vector<16x256xf32>, vector<16x256xf32> -> vector<16x256xf32>
    %171 = arith.addf %153, %170 : vector<16x256xf32>
    %c0_75 = arith.constant 0 : index
    %c0_76 = arith.constant 0 : index
    %172 = vector.load %arg7[%c0_75, %c0_76] : memref<16x1xf32, #tpu.memory_space<vmem>>, vector<16x1xf32>
    %173 = vector.broadcast %172 : vector<16x1xf32> to vector<16x256xf32>
    %174 = arith.addf %171, %173 : vector<16x256xf32>
    %175 = arith.negf %174 : vector<16x256xf32>
    %176 = math.exp %175 : vector<16x256xf32>
    %cst_77 = arith.constant 1.000000e+00 : f32
    %177 = vector.broadcast %cst_77 : f32 to vector<16x256xf32>
    %178 = arith.addf %177, %176 : vector<16x256xf32>
    %179 = arith.divf %177, %178 : vector<16x256xf32>
    %180 = arith.mulf %174, %179 : vector<16x256xf32>
    %181 = arith.addf %13, %180 : vector<16x256xf32>
    %c0_78 = arith.constant 0 : index
    %c0_79 = arith.constant 0 : index
    %182 = vector.load %arg8[%c0_78, %c0_79] : memref<32x16xf32, #tpu.memory_space<vmem>>, vector<32x16xf32>
    %cst_80 = arith.constant dense<0.000000e+00> : vector<32x256xf32>
    %183 = tpu.matmul %182, %181, %cst_80 {dimension_numbers = #tpu.dot_dimension_numbers<[1], [0], [0], [1], [0, 0, 1, 1], [], []>} : vector<32x16xf32>, vector<16x256xf32>, vector<32x256xf32> -> vector<32x256xf32>
    %c0_81 = arith.constant 0 : index
    %c0_82 = arith.constant 0 : index
    %184 = vector.load %arg9[%c0_81, %c0_82] : memref<32x16xf32, #tpu.memory_space<vmem>>, vector<32x16xf32>
    %cst_83 = arith.constant dense<0.000000e+00> : vector<32x256xf32>
    %185 = tpu.matmul %184, %14, %cst_83 {dimension_numbers = #tpu.dot_dimension_numbers<[1], [0], [0], [1], [0, 0, 1, 1], [], []>} : vector<32x16xf32>, vector<16x256xf32>, vector<32x256xf32> -> vector<32x256xf32>
    %186 = arith.addf %183, %185 : vector<32x256xf32>
    %c0_84 = arith.constant 0 : index
    %c0_85 = arith.constant 0 : index
    %187 = vector.load %arg10[%c0_84, %c0_85] : memref<32x1xf32, #tpu.memory_space<vmem>>, vector<32x1xf32>
    %188 = vector.broadcast %187 : vector<32x1xf32> to vector<32x256xf32>
    %189 = arith.addf %186, %188 : vector<32x256xf32>
    %190 = arith.negf %189 : vector<32x256xf32>
    %191 = math.exp %190 : vector<32x256xf32>
    %cst_86 = arith.constant 1.000000e+00 : f32
    %192 = vector.broadcast %cst_86 : f32 to vector<32x256xf32>
    %193 = arith.addf %192, %191 : vector<32x256xf32>
    %194 = arith.divf %192, %193 : vector<32x256xf32>
    %195 = arith.mulf %189, %194 : vector<32x256xf32>
    %c0_87 = arith.constant 0 : index
    %c0_88 = arith.constant 0 : index
    %c0_89 = arith.constant 0 : index
    %196 = vector.load %arg11[%c0_87, %c0_88, %c0_89] : memref<1x32x256xf32, #tpu.memory_space<vmem>>, vector<1x32x256xf32>
    %197 = vector.shape_cast %196 : vector<1x32x256xf32> to vector<32x256xf32>
    %198 = vector.shape_cast %195 : vector<32x256xf32> to vector<1x32x256xf32>
    tpu.vector_store %arg11[%c0_87, %c0_88, %c0_89], %198 {strides = array<i32>} : memref<1x32x256xf32, #tpu.memory_space<vmem>>, vector<1x32x256xf32>,
    return
  }
  func.func @transform_0(%arg0: i32) -> (i32, i32, i32) {
    %c0_i32 = arith.constant 0 : i32
    %c0_i32_0 = arith.constant 0 : i32
    %c0_i32_1 = arith.constant 0 : i32
    return %arg0, %c0_i32, %c0_i32_0 : i32, i32, i32
  }
  func.func @transform_1(%arg0: i32) -> (i32, i32) {
    %c0_i32 = arith.constant 0 : i32
    %c0_i32_0 = arith.constant 0 : i32
    %c0_i32_1 = arith.constant 0 : i32
    return %c0_i32, %c0_i32_0 : i32, i32
  }
  func.func @transform_2(%arg0: i32) -> (i32, i32) {
    %c0_i32 = arith.constant 0 : i32
    %c0_i32_0 = arith.constant 0 : i32
    %c0_i32_1 = arith.constant 0 : i32
    return %c0_i32, %c0_i32_0 : i32, i32
  }
  func.func @transform_3(%arg0: i32) -> (i32, i32) {
    %c0_i32 = arith.constant 0 : i32
    %c0_i32_0 = arith.constant 0 : i32
    %c0_i32_1 = arith.constant 0 : i32
    return %c0_i32, %c0_i32_0 : i32, i32
  }
  func.func @transform_4(%arg0: i32) -> (i32, i32) {
    %c0_i32 = arith.constant 0 : i32
    %c0_i32_0 = arith.constant 0 : i32
    %c0_i32_1 = arith.constant 0 : i32
    return %c0_i32, %c0_i32_0 : i32, i32
  }
  func.func @transform_5(%arg0: i32) -> (i32, i32, i32, i32) {
    %c0_i32 = arith.constant 0 : i32
    %c0_i32_0 = arith.constant 0 : i32
    %c0_i32_1 = arith.constant 0 : i32
    %c0_i32_2 = arith.constant 0 : i32
    %c0_i32_3 = arith.constant 0 : i32
    return %c0_i32, %c0_i32_0, %c0_i32_1, %c0_i32_2 : i32, i32, i32, i32
  }
  func.func @transform_6(%arg0: i32) -> (i32, i32) {
    %c0_i32 = arith.constant 0 : i32
    %c0_i32_0 = arith.constant 0 : i32
    %c0_i32_1 = arith.constant 0 : i32
    return %c0_i32, %c0_i32_0 : i32, i32
  }
  func.func @transform_7(%arg0: i32) -> (i32, i32) {
    %c0_i32 = arith.constant 0 : i32
    %c0_i32_0 = arith.constant 0 : i32
    %c0_i32_1 = arith.constant 0 : i32
    return %c0_i32, %c0_i32_0 : i32, i32
  }
  func.func @transform_8(%arg0: i32) -> (i32, i32) {
    %c0_i32 = arith.constant 0 : i32
    %c0_i32_0 = arith.constant 0 : i32
    %c0_i32_1 = arith.constant 0 : i32
    return %c0_i32, %c0_i32_0 : i32, i32
  }
  func.func @transform_9(%arg0: i32) -> (i32, i32) {
    %c0_i32 = arith.constant 0 : i32
    %c0_i32_0 = arith.constant 0 : i32
    %c0_i32_1 = arith.constant 0 : i32
    return %c0_i32, %c0_i32_0 : i32, i32
  }
  func.func @transform_10(%arg0: i32) -> (i32, i32, i32) {
    %c0_i32 = arith.constant 0 : i32
    %c0_i32_0 = arith.constant 0 : i32
    %c0_i32_1 = arith.constant 0 : i32
    return %arg0, %c0_i32, %c0_i32_0 : i32, i32, i32
  }
}

</mosaic_0001>

<bundles_post_ra>
// kernel: c3_forward.1
= control target key start
LH: loop header
LB: loop body
LE: loop exit
PB: predicated region body
PF: predicated region fallthrough
CT: control target
= control target key end

     0   :  { %s2673_s13 = smov 0   ;;  %s3011_s0 = inlined_call_operand.vmem [shape: f32[2,16,256], index: 0, kind: input, shape index: {}]   ;;  %s3012_s1 = inlined_call_operand.vmem [shape: f32[32,16], index: 1, kind: input, shape index: {}]   ;;  %s3013_s2 = inlined_call_operand.vmem [shape: f32[32,1], index: 2, kind: input, shape index: {}]   ;;  %s3014_s3 = inlined_call_operand.vmem [shape: f32[16,16], index: 3, kind: input, shape index: {}]   ;;  %s3015_s4 = inlined_call_operand.vmem [shape: f32[16,1], index: 4, kind: input, shape index: {}]   ;;  %s3016_s5 = inlined_call_operand.vmem [shape: f32[3,3,16,16], index: 5, kind: input, shape index: {}]   ;;  %s3017_s6 = inlined_call_operand.vmem [shape: f32[16,1], index: 6, kind: input, shape index: {}]   ;;  %s3018_s7 = inlined_call_operand.vmem [shape: f32[32,16], index: 7, kind: input, shape index: {}]   ;;  %s3019_s8 = inlined_call_operand.vmem [shape: f32[32,16], index: 8, kind: input, shape index: {}]   ;;  %s3020_s9 = inlined_call_operand.vmem [shape: f32[32,1], index: 9, kind: input, shape index: {}]   ;;  %s3021_s10 = inlined_call_operand.vmem [shape: f32[2,32,256], index: 10, kind: output, shape index: {}]  }
   0x1 LB: > { %s2165_s14 = sadd.s32 4294967295, %s2605_s13   ;;  %p2169_p0 = scmp.ge.s32.totalorder %s2605_s13, 1  ;;  %s2605_s13 = sphi %s2673_s13, %s20_s13  }
   0x2   : > { %p312_p1 = scmp.lt.s32.totalorder %s2605_s13, 3 }
   0x4   : > { %p313_p2 = pnand %p2169_p0, %p312_p1 }
   0x5   : > { %p350_p3 = scmp.lt.s32.totalorder (!%p313_p2), %s2165_s14, 1  ;;  %v2607_v0 = vmov (!%p313_p2), 0.0   ;;  %v2608_v1 = vmov (!%p313_p2), 0   ;;  %v368_v2 = vld [vmem:[%s3013_s2] sm:$0xff] (!%p313_p2)  ;;  %v369_v3 = vld [vmem:[%s3013_s2 + $0x8] sm:$0xff] (!%p313_p2)  ;;  %vm392_vm0 = vcmask (!%p313_p2), 130048  }
   0x6   : > { %316 = sbr.rel (%p313_p2) target bundleno = 1335 (0x537), region = 60  ;;  %469 = vmatprep.mubr.f32.mxu0 (!%p313_p2), %v2607_v0  ;;  %2381 = vset.pattern.permute.xlu0 (!%p313_p2), %v2608_v1  ;;  %v364_v10 = vld [vmem:[%s3012_s1] sm:$0xff] (!%p313_p2)  ;;  %v365_v11 = vld [vmem:[%s3012_s1 + $0x8] sm:$0xff] (!%p313_p2)  ;;  %v366_v12 = vld [vmem:[%s3012_s1 + $0x10] sm:$0xff] (!%p313_p2)  ;;  %vm702_vm1 = vcmask (!%p313_p2), 138240   ;;  %vm705_vm2 = vcmask (!%p313_p2), 277640  }
   0x7   : > { %374 = vperm.xlu0 (!%p313_p2), %2381, %v368_v2   ;;  %2382 = vset.pattern.permute.xlu1 (!%p313_p2), %v2608_v1  ;;  %v367_v13 = vld [vmem:[%s3012_s1 + $0x18] sm:$0xff] (!%p313_p2)  ;;  %v579_v14 = vld [vmem:[%s3015_s4] sm:$0xff] (!%p313_p2)  ;;  %v580_v15 = vld [vmem:[%s3015_s4 + $0x8] sm:$0xff] (!%p313_p2)  ;;  %703 = vst.msk [vmem:[#allocation2] sm:$0xff] (!%p313_p2), %vm702_vm1, %v2607_v0  ;;  %s2609_s21 = smov (!%p313_p2), 17   ;;  %vm728_vm3 = vcmask (!%p313_p2), 1047688  }
   0x8   : > { %955 = vmatprep.mubr.f32.mxu1 (!%p313_p2), %v2607_v0  ;;  %583 = vperm.xlu1 (!%p313_p2), %2382, %v579_v14   ;;  %v577_v48 = vld [vmem:[%s3014_s3] sm:$0xff] (!%p313_p2)  ;;  %v578_v49 = vld [vmem:[%s3014_s3 + $0x8] sm:$0xff] (!%p313_p2)  ;;  %704 = vst.msk [vmem:[#allocation2 + $0x18] sm:$0xff] (!%p313_p2), %vm702_vm1, %v2607_v0  ;;  %s2611_s27 = smov (!%p313_p2), 112   ;;  %s2612_s28 = smov (!%p313_p2), 111   ;;  %vm992_vm8 = vcmask (!%p313_p2), 1031168  }
   0x9   : > { %706 = vst.msk [vmem:[#allocation2 + $0x10] sm:$0xff] (!%p313_p2), %vm705_vm2, %v2607_v0  ;;  %707 = vst.msk [vmem:[#allocation2 + $0x28] sm:$0xff] (!%p313_p2), %vm705_vm2, %v2607_v0  ;;  %s2613_s29 = smov (!%p313_p2), 110   ;;  %s2614_s30 = smov (!%p313_p2), 96   ;;  %vm1104_vm12 = vcmask (!%p313_p2), 916480   ;;  %vm1216_vm14 = vcmask (!%p313_p2), 908288  }
   0xa   : > { %s2615_s11 = smov (!%p313_p2), 95   ;;  %s2616_s12 = smov (!%p313_p2), 127   ;;  %vm1324_vm15 = vcmask (!%p313_p2), 900096   ;;  %vm1548_vm2 = vcmask (!%p313_p2), 777216  }
   0xb   : > { %379 = vperm.xlu0 (!%p313_p2), %2381, %v369_v3   ;;  %s2617_s15 = smov (!%p313_p2), 94  }
   0xc   : > { %588 = vperm.xlu1 (!%p313_p2), %2382, %v580_v15  }
   0xd   : > { %s3031_s14 = smov (!%p350_p3, %s2165_s14), 1 }
   0xe   : > { %s2256_s19 = sshll.u32 %s3031_s14, 5  ;;  %s2257_s26 = sshll.u32 %s3031_s14, 6 }
   0xf   : > { %s354_s22 = scalar_lea.vmem %s3011_s0, %s2256_s19 }
  0x10   : > { %v361_v4 = vld [vmem:[%s354_s22 + $0x8] sm:$0xff]  ;;  %v363_v5 = vld [vmem:[%s354_s22 + $0x18] sm:$0xff]  ;;  %v360_v6 = vld [vmem:[%s354_s22] sm:$0xff] }
  0x11   : > { %v2258_v7 = vpack.c.bf16 %v363_v5, %v361_v4  ;;  %v362_v8 = vld [vmem:[%s354_s22 + $0x10] sm:$0xff]  ;;  %s2610_s22 = smov 126  }
  0x12   : > { %v2260_v9 = vpack.c.bf16 %v362_v8, %v360_v6 }
  0x13   : > { %2259 = vmatprep.subr.bf16.mxu0 %v2258_v7 }
  0x14   : > { %2261 = vmatpush1.bf16.msra.mxu0 %v2260_v9 }
  0x17   : > { %2174 = vmatmul.mubr.msk.f32.vlgmr.msra.gmra.mrb[0].mxu0 %vm392_vm0, %v364_v10 }
  0x18   : > { %475 = vmatprep.mubr.f32.mxu0 %v2607_v0 }
  0x1b   : > { %2175 = vmatmul.mubr.msk.f32.gmra.mrb[2].mxu0 %vm392_vm0, %v365_v11 }
  0x1c   : > { %481 = vmatprep.mubr.f32.mxu0 %v2607_v0 }
  0x1f   : > { %2176 = vmatmul.mubr.msk.f32.gmra.mrb[4].mxu0 %vm392_vm0, %v366_v12 }
  0x20   : > { %487 = vmatprep.mubr.f32.mxu0 %v2607_v0 }
  0x23   : > { %2177 = vmatmul.mubr.msk.f32.gmra.mrb[6].mxu0 %vm392_vm0, %v367_v13 }
  0x24   : > { %661 = vmatprep.mubr.f32.mxu0 %v2607_v0 }
  0x86   : > { %v375_v16 = vpop.permute.xlu0 %374 }
  0x87   : > { %v584_v54 = vpop.permute.xlu1 %583 }
  0x8a   : > { %v380_v22 = vpop.permute.xlu0 %379 }
  0x8b   : > { %v589_v60 = vpop.permute.xlu1 %588 }
  0xea   : > { %v471_v17 = vpop.f32.mrb[0].mxu0 }
  0xeb   : > { %v472_v18 = vadd.f32 %v471_v17, %v375_v16  ;;  %v473_v19 = vpop.f32.mrb[1].mxu0 }
  0xec   : > { %v474_v20 = vadd.f32 %v473_v19, %v375_v16 }
  0xed   : > { %v2178_v21 = vmul.f32 -1.442695, %v472_v18 }
  0xee   : > { %v2179_v23 = vmul.f32 -1.442695, %v474_v20  ;;  %v477_v24 = vpop.f32.mrb[2].mxu0 }
  0xef   : > { %2503 = vpow2.f32 %v2178_v21  ;;  %v478_v25 = vadd.f32 %v477_v24, %v380_v22  ;;  %v479_v26 = vpop.f32.mrb[3].mxu0  ;;  %v550_v21 = vlaneseq }
  0xf0   : > { %2505 = vpow2.f32 %v2179_v23  ;;  %v480_v27 = vadd.f32 %v479_v26, %v380_v22 }
  0xf1   : > { %v2180_v28 = vmul.f32 -1.442695, %v478_v25  ;;  %v2757_v22 = vand.u32 127, %v550_v21 }
  0xf2   : > { %v2181_v29 = vmul.f32 -1.442695, %v480_v27  ;;  %v2743_v50 = vpop.f32.mrb[4].mxu0 }
  0xf3   : > { %2507 = vpow2.f32 %v2180_v28  ;;  %v2745_v51 = vpop.f32.mrb[5].mxu0  ;;  %v2760_v23 = vadd.s32 128, %v2757_v22  ;;  %v557_v28 = vand.u32 15, %v2757_v22 }
  0xf4   : > { %2509 = vpow2.f32 %v2181_v29 }
  0xf5   : > { %v564_v24 = vand.u32 15, %v2760_v23 }
  0xf6   : > { %v2747_v52 = vpop.f32.mrb[6].mxu0 }
  0xf7   : > { %v2749_v53 = vpop.f32.mrb[7].mxu0 }
  0xf9   : > { %v2504_v30 = vpop.eup %2503 }
  0xfa   : > { %v2506_v31 = vpop.eup %2505  ;;  %v518_v32 = vadd.f32 1.0, %v2504_v30 }
  0xfb   : > { %v519_v33 = vadd.f32 1.0, %v2506_v31 }
  0xfc   : > { %2511 = vrcp.f32 %v518_v32  ;;  %v757_v32 = vadd.s32 4294967295, %v557_v28 }
  0xfd   : > { %v2508_v34 = vpop.eup %2507  ;;  %2513 = vrcp.f32 %v519_v33 }
  0xfe   : > { %v2510_v35 = vpop.eup %2509  ;;  %v520_v36 = vadd.f32 1.0, %v2508_v34  ;;  %vm759_vm6 = vcmp.ge.s32.totalorder %v757_v32, 0 }
  0xff   : > { %v521_v37 = vadd.f32 1.0, %v2510_v35  ;;  %vm2778_vm7 = vmpackc.low %vm759_vm6, %vm759_vm6 }
 0x100   : > { %2515 = vrcp.f32 %v520_v36 }
 0x101   : > { %2517 = vrcp.f32 %v521_v37 }
 0x106   : > { %v2512_v38 = vpop.eup %2511 }
 0x107   : > { %v2514_v39 = vpop.eup %2513  ;;  %v2727_v45 = vmul.f32 %v2512_v38, %v472_v18 }
 0x108   : > { %v2723_v43 = vmul.f32 %v2514_v39, %v474_v20 }
 0x10a   : > { %v2516_v40 = vpop.eup %2515 }
 0x10b   : > { %v2518_v41 = vpop.eup %2517  ;;  %v2721_v42 = vmul.f32 %v2516_v40, %v478_v25  ;;  %v758_v25 = vadd.s32 4294967295, %v564_v24 }
 0x10c   : > { %v2725_v44 = vmul.f32 %v2518_v41, %v480_v27 }
 0x10d   : > { %v2264_v47 = vpack.c.bf16 %v2721_v42, %v2727_v45  ;;  %vm760_vm4 = vcmp.ge.s32.totalorder %v758_v25, 0 }
 0x10e   : > { %v2262_v46 = vpack.c.bf16 %v2725_v44, %v2723_v43  ;;  %vm2772_vm5 = vmpackc.low %vm760_vm4, %vm760_vm4  ;;  %vm1656_vm4 = vcmask 769024  }
 0x110   : > { %2263 = vmatprep.subr.bf16.mxu0 %v2262_v46 }
 0x111   : > { %2265 = vmatpush1.bf16.msra.mxu0 %v2264_v47 }
 0x114   : > { %2186 = vmatmul.mubr.msk.f32.vlgmr.msra.gmra.mrb[8].mxu0 %vm392_vm0, %v577_v48 }
 0x115   : > { %667 = vmatprep.mubr.f32.mxu0 %v2607_v0 }
 0x118   : > { %2187 = vmatmul.mubr.msk.f32.gmra.mrb[10].mxu0 %vm392_vm0, %v578_v49  ;;  %v735_v49 = vld [vmem:[%s3016_s5] sm:$0xff] }
 0x119   : > { %872 = vmatprep.mubr.f32.mxu0 %v2607_v0 }
 0x1e7   : > { %v663_v55 = vpop.f32.mrb[8].mxu0 }
 0x1e8   : > { %v664_v56 = vadd.f32 %v663_v55, %v584_v54  ;;  %v665_v57 = vpop.f32.mrb[9].mxu0  ;;  %v370_v55 = vld [vmem:[%s3013_s2 + $0x10] sm:$0xff] }
 0x1e9   : > { %v666_v58 = vadd.f32 %v665_v57, %v584_v54  ;;  %v736_v54 = vld [vmem:[%s3016_s5 + $0x8] sm:$0xff]  ;;  %v371_v57 = vld [vmem:[%s3013_s2 + $0x18] sm:$0xff] }
 0x1ea   : > { %v2188_v59 = vmul.f32 -1.442695, %v664_v56 }
 0x1eb   : > { %v2189_v61 = vmul.f32 -1.442695, %v666_v58  ;;  %v669_v62 = vpop.f32.mrb[10].mxu0 }
 0x1ec   : > { %2519 = vpow2.f32 %v2188_v59  ;;  %v670_v63 = vadd.f32 %v669_v62, %v589_v60  ;;  %v671_v1 = vpop.f32.mrb[11].mxu0  ;;  %v1757_v59 = vld [vmem:[%s3017_s6 + $0x8] sm:$0xff]  ;;  %v2017_v62 = vld [vmem:[%s3020_s9 + $0x18] sm:$0xff] }
 0x1ed   : > { %2521 = vpow2.f32 %v2189_v61  ;;  %v672_v2 = vadd.f32 %v671_v1, %v589_v60  ;;  %v2016_v60 = vld [vmem:[%s3020_s9 + $0x10] sm:$0xff]  ;;  %v2015_v61 = vld [vmem:[%s3020_s9 + $0x8] sm:$0xff]  ;;  %v969_v1 = vadd.s32 1, %v564_v24 }
 0x1ee   : > { %v2190_v3 = vmul.f32 -1.442695, %v670_v63 }
 0x1ef   : > { %v2191_v4 = vmul.f32 -1.442695, %v672_v2  ;;  %vm973_vm9 = vcmp.lt.s32.totalorder %v969_v1, 16 }
 0x1f0   : > { %2523 = vpow2.f32 %v2190_v3  ;;  %vm2822_vm11 = vmpackc.low %vm973_vm9, %vm973_vm9 }
 0x1f1   : > { %2525 = vpow2.f32 %v2191_v4 }
 0x1f6   : > { %v2520_v5 = vpop.eup %2519 }
 0x1f7   : > { %v2522_v6 = vpop.eup %2521  ;;  %v686_v7 = vadd.f32 1.0, %v2520_v5 }
 0x1f8   : > { %v687_v8 = vadd.f32 1.0, %v2522_v6 }
 0x1f9   : > { %2527 = vrcp.f32 %v686_v7 }
 0x1fa   : > { %v2524_v9 = vpop.eup %2523  ;;  %2529 = vrcp.f32 %v687_v8 }
 0x1fb   : > { %v2526_v10 = vpop.eup %2525  ;;  %v688_v11 = vadd.f32 1.0, %v2524_v9 }
 0x1fc   : > { %v689_v12 = vadd.f32 1.0, %v2526_v10 }
 0x1fd   : > { %2531 = vrcp.f32 %v688_v11 }
 0x1fe   : > { %2533 = vrcp.f32 %v689_v12 }
 0x203   : > { %v2528_v13 = vpop.eup %2527 }
 0x204   : > { %v2530_v14 = vpop.eup %2529  ;;  %v698_v15 = vmul.f32 %v2528_v13, %v664_v56  ;;  %v1756_v56 = vld [vmem:[%s3017_s6] sm:$0xff] }
 0x205   : > { %v699_v16 = vmul.f32 %v2530_v14, %v666_v58  ;;  %v2014_v58 = vld [vmem:[%s3020_s9] sm:$0xff] }
 0x206   : > { %712 = vrot.lane.b32.xlu0 %v698_v15, %s2609_s21  ;;  %v750_v15 = vld [vmem:[%s3016_s5 + $0x78] sm:$0xff] }
 0x207   : > { %v2532_v17 = vpop.eup %2531  ;;  %714 = vrot.lane.b32.xlu1 %v699_v16, %s2609_s21 }
 0x208   : > { %v2534_v18 = vpop.eup %2533  ;;  %v700_v19 = vmul.f32 %v2532_v17, %v670_v63 }
 0x209   : > { %v701_v20 = vmul.f32 %v2534_v18, %v672_v2  ;;  %v968_v2 = vadd.s32 1, %v557_v28 }
 0x20a   : > { %716 = vrot.lane.b32.xlu0 %v700_v19, %s2609_s21 }
 0x20b   : > { %718 = vrot.lane.b32.xlu1 %v701_v20, %s2609_s21  ;;  %vm972_vm10 = vcmp.lt.s32.totalorder %v968_v2, 16 }
 0x20c   : > { %vm2826_vm13 = vmpackc.low %vm972_vm10, %vm972_vm10 }
 0x278   : > { %v713_v26 = vpop.permute.xlu0 %712 }
 0x279   : > { %729 = vst.msk [vmem:[#allocation2] sm:$0xff] %vm728_vm3, %v713_v26  ;;  %v715_v27 = vpop.permute.xlu1 %714 }
 0x27a   : > { %v720_v29 = vsel %vm702_vm1, %v713_v26, %v715_v27  ;;  %731 = vst.msk [vmem:[#allocation2 + $0x10] sm:$0xff] %vm702_vm1, %v715_v27  ;;  %v739_v27 = vld [vmem:[%s3016_s5 + $0x20] sm:$0xff] }
 0x27c   : > { %v717_v30 = vpop.permute.xlu0 %716 }
 0x27d   : > { %732 = vst.msk [vmem:[#allocation2 + $0x18] sm:$0xff] %vm728_vm3, %v717_v30  ;;  %v719_v31 = vpop.permute.xlu1 %718  ;;  %vm793_vm3 = vcmask 1039360  }
 0x27e   : > { %v721_v33 = vsel %vm702_vm1, %v717_v30, %v719_v31  ;;  %734 = vst.msk [vmem:[#allocation2 + $0x28] sm:$0xff] %vm702_vm1, %v719_v31  ;;  %vm1436_vm1 = vcmask 785408  }
 0x27f   : > { %v2270_v35 = vpack.c.bf16 %v721_v33, %v720_v29 }
 0x280   : > { %v753_v38 = vld [vmem:[#allocation2] sm:$0xff] }
 0x281   : > { %v773_v36 = vld [vmem:[#allocation2 + $0x10] sm:$0xff]  ;;  %2272 = vmatprep.subr.msk.bf16.mxu1 %vm2772_vm5, %v2270_v35 }
 0x282   : > { %v2383_v37 = vpack.i.bf16 %v773_v36, %v720_v29 }
 0x284   : > { %2384 = vrot.lane.b32.xlu0 %v2383_v37, %s2610_s22  ;;  %v755_v39 = vld [vmem:[#allocation2 + $0x18] sm:$0xff] }
 0x285   : > { %v2393_v41 = vpack.i.bf16 %v755_v39, %v753_v38  ;;  %v774_v46 = vld [vmem:[#allocation2 + $0x28] sm:$0xff]  ;;  %v2273_v47 = vpack.c.bf16 %v755_v39, %v753_v38 }
 0x286   : > { %v2388_v48 = vpack.i.bf16 %v774_v46, %v721_v33  ;;  %v740_v38 = vld [vmem:[%s3016_s5 + $0x28] sm:$0xff] }
 0x287   : > { %2275 = vmatpush1.bf16.msk.msra.mxu1 %vm2778_vm7, %v2273_v47 }
 0x288   : > { %2394 = vrot.lane.b32.xlu0 %v2393_v41, %s2610_s22  ;;  %2389 = vrot.lane.b32.xlu1 %v2388_v48, %s2610_s22 }
 0x28a   : > { %2198 = vmatmul.mubr.msk.f32.vlgmr.msra.gmra.mrb[0].mxu1 %vm392_vm0, %v735_v49 }
 0x28b   : > { %961 = vmatprep.mubr.f32.mxu1 %v2607_v0 }
 0x28c   : > { %2404 = vrot.lane.b32.xlu0 %v2388_v48, %s2611_s27  ;;  %2399 = vrot.lane.b32.xlu1 %v2383_v37, %s2611_s27 }
 0x28e   : > { %2199 = vmatmul.mubr.msk.f32.gmra.mrb[2].mxu1 %vm392_vm0, %v736_v54 }
 0x28f   : > { %1075 = vmatprep.mubr.f32.mxu1 %v2607_v0 }
 0x290   : > { %2414 = vrot.lane.b32.xlu0 %v2383_v37, %s2612_s28  ;;  %2409 = vrot.lane.b32.xlu1 %v2393_v41, %s2611_s27 }
 0x294   : > { %2424 = vrot.lane.b32.xlu0 %v2393_v41, %s2612_s28  ;;  %2419 = vrot.lane.b32.xlu1 %v2388_v48, %s2612_s28 }
 0x298   : > { %2434 = vrot.lane.b32.xlu0 %v2388_v48, %s2613_s29  ;;  %2429 = vrot.lane.b32.xlu1 %v2383_v37, %s2613_s29 }
 0x29c   : > { %2444 = vrot.lane.b32.xlu0 %v2383_v37, %s2614_s30  ;;  %2439 = vrot.lane.b32.xlu1 %v2393_v41, %s2613_s29  ;;  %s359_s29 = scalar_lea.vmem %s3021_s10, %s2257_s26 }
 0x2a0   : > { %2449 = vrot.lane.b32.xlu0 %v2393_v41, %s2614_s30  ;;  %2454 = vrot.lane.b32.xlu1 %v2388_v48, %s2614_s30 }
 0x2a4   : > { %2469 = vrot.lane.b32.xlu0 %v2388_v48, %s2615_s11  ;;  %2459 = vrot.lane.b32.xlu1 %v2383_v37, %s2615_s11 }
 0x2a8   : > { %2474 = vrot.lane.b32.xlu0 %v2383_v37, %s2616_s12  ;;  %2464 = vrot.lane.b32.xlu1 %v2393_v41, %s2615_s11 }
 0x2ac   : > { %2479 = vrot.lane.b32.xlu0 %v2383_v37, %s2617_s15  ;;  %2489 = vrot.lane.b32.xlu1 %v2388_v48, %s2616_s12 }
 0x2b0   : > { %2484 = vrot.lane.b32.xlu0 %v2393_v41, %s2616_s12  ;;  %2494 = vrot.lane.b32.xlu1 %v2388_v48, %s2617_s15 }
 0x2b4   : > { %384 = vperm.xlu0 %2381, %v370_v55   ;;  %2499 = vrot.lane.b32.xlu1 %v2393_v41, %s2617_s15 }
 0x2b8   : > { %1760 = vperm.xlu0 %2381, %v1756_v56   ;;  %389 = vperm.xlu1 %2382, %v371_v57  }
 0x2bc   : > { %2020 = vperm.xlu0 %2381, %v2014_v58   ;;  %1765 = vperm.xlu1 %2382, %v1757_v59   ;;  %v741_v58 = vld [vmem:[%s3016_s5 + $0x30] sm:$0xff] }
 0x2c0   : > { %2030 = vperm.xlu0 %2381, %v2016_v60   ;;  %2025 = vperm.xlu1 %2382, %v2015_v61  }
 0x2c4   : > { %2035 = vperm.xlu1 %2382, %v2017_v62  }
 0x2f6   : > { %v2385_v63 = vpop.permute.xlu0 %2384 }
 0x2f7   : > { %v2387_v3 = vunpack.i.h.bf16 %v2385_v63  ;;  %v2386_v4 = vunpack.i.l.bf16 %v2385_v63 }
 0x2f9   : > { %v994_v11 = vsel %vm992_vm8, %v2386_v4, %v2387_v3 }
 0x2fa   : > { %v2390_v5 = vpop.permute.xlu1 %2389  ;;  %v2395_v6 = vpop.permute.xlu0 %2394 }
 0x2fb   : > { %v2392_v7 = vunpack.i.h.bf16 %v2390_v5  ;;  %v2391_v8 = vunpack.i.l.bf16 %v2390_v5  ;;  %v2397_v9 = vunpack.i.h.bf16 %v2395_v6  ;;  %v2396_v10 = vunpack.i.l.bf16 %v2395_v6 }
 0x2fd   : > { %v996_v12 = vsel %vm992_vm8, %v2391_v8, %v2392_v7  ;;  %v995_v13 = vsel %vm992_vm8, %v2397_v9, %v2391_v8  ;;  %v993_v14 = vsel %vm992_vm8, %v2396_v10, %v2386_v4  ;;  %v742_v7 = vld [vmem:[%s3016_s5 + $0x38] sm:$0xff] }
 0x2fe   : > { %v2276_v16 = vpack.c.bf16 %v996_v12, %v994_v11  ;;  %v2279_v17 = vpack.c.bf16 %v995_v13, %v993_v14  ;;  %v2400_v18 = vpop.permute.xlu1 %2399  ;;  %v2405_v19 = vpop.permute.xlu0 %2404 }
 0x2ff   : > { %v2402_v21 = vunpack.i.h.bf16 %v2400_v18  ;;  %v2401_v22 = vunpack.i.l.bf16 %v2400_v18  ;;  %v2407_v23 = vunpack.i.h.bf16 %v2405_v19  ;;  %v2406_v24 = vunpack.i.l.bf16 %v2405_v19  ;;  %v743_v18 = vld [vmem:[%s3016_s5 + $0x40] sm:$0xff] }
 0x300   : > { %2278 = vmatprep.subr.msk.bf16.mxu1 %vm2822_vm11, %v2276_v16 }
 0x301   : > { %v1106_v25 = vsel %vm1104_vm12, %v2401_v22, %v2402_v21  ;;  %v1108_v26 = vsel %vm1104_vm12, %v2406_v24, %v2407_v23  ;;  %2281 = vmatpush1.bf16.msk.msra.mxu1 %vm2826_vm13, %v2279_v17 }
 0x302   : > { %v2282_v28 = vpack.c.bf16 %v1108_v26, %v1106_v25  ;;  %v2410_v29 = vpop.permute.xlu1 %2409  ;;  %v2415_v30 = vpop.permute.xlu0 %2414 }
 0x303   : > { %v2412_v31 = vunpack.i.h.bf16 %v2410_v29  ;;  %v2411_v32 = vunpack.i.l.bf16 %v2410_v29  ;;  %v2417_v33 = vunpack.i.h.bf16 %v2415_v30  ;;  %v2416_v35 = vunpack.i.l.bf16 %v2415_v30  ;;  %v744_v29 = vld [vmem:[%s3016_s5 + $0x48] sm:$0xff] }
 0x304   : > { %2204 = vmatmul.mubr.msk.f32.vlgmr.msra.gmra.mrb[0].mxu1 %vm392_vm0, %v739_v27  ;;  %2284 = vmatprep.subr.msk.bf16.mxu1 %vm2772_vm5, %v2282_v28 }
 0x305   : > { %v1105_v36 = vsel %vm1104_vm12, %v2411_v32, %v2401_v22  ;;  %v1107_v37 = vsel %vm1104_vm12, %v2412_v31, %v2406_v24  ;;  %1081 = vmatprep.mubr.f32.mxu1 %v2607_v0  ;;  %v1218_v55 = vsel %vm1216_vm14, %v2416_v35, %v2417_v33 }
 0x306   : > { %v2285_v39 = vpack.c.bf16 %v1107_v37, %v1105_v36  ;;  %v2420_v41 = vpop.permute.xlu1 %2419  ;;  %v2425_v46 = vpop.permute.xlu0 %2424 }
 0x307   : > { %v2422_v47 = vunpack.i.h.bf16 %v2420_v41  ;;  %v2421_v48 = vunpack.i.l.bf16 %v2420_v41  ;;  %v2427_v49 = vunpack.i.h.bf16 %v2425_v46  ;;  %v2426_v54 = vunpack.i.l.bf16 %v2425_v46  ;;  %v745_v41 = vld [vmem:[%s3016_s5 + $0x50] sm:$0xff] }
 0x308   : > { %2205 = vmatmul.mubr.msk.f32.gmra.mrb[2].mxu1 %vm392_vm0, %v740_v38 }
 0x309   : > { %v1219_v56 = vsel %vm1216_vm14, %v2427_v49, %v2421_v48  ;;  %v1217_v57 = vsel %vm1216_vm14, %v2426_v54, %v2416_v35  ;;  %2287 = vmatpush1.bf16.msk.msra.mxu1 %vm2778_vm7, %v2285_v39  ;;  %1187 = vmatprep.mubr.f32.mxu1 %v2607_v0  ;;  %v1220_v59 = vsel %vm1216_vm14, %v2421_v48, %v2422_v47 }
 0x30a   : > { %v2290_v60 = vpack.c.bf16 %v1219_v56, %v1217_v57  ;;  %v2430_v61 = vpop.permute.xlu1 %2429  ;;  %v2435_v62 = vpop.permute.xlu0 %2434  ;;  %v2288_v63 = vpack.c.bf16 %v1220_v59, %v1218_v55  ;;  %v746_v59 = vld [vmem:[%s3016_s5 + $0x58] sm:$0xff] }
 0x30b   : > { %v2432_v1 = vunpack.i.h.bf16 %v2430_v61  ;;  %v2431_v2 = vunpack.i.l.bf16 %v2430_v61  ;;  %v2437_v3 = vunpack.i.h.bf16 %v2435_v62  ;;  %v2436_v4 = vunpack.i.l.bf16 %v2435_v62 }
 0x30c   : > { %2210 = vmatmul.mubr.msk.f32.vlgmr.msra.gmra.mrb[0].mxu1 %vm392_vm0, %v741_v58  ;;  %2289 = vmatprep.subr.bf16.mxu1 %v2288_v63 }
 0x30d   : > { %v1326_v5 = vsel %vm1324_vm15, %v2431_v2, %v2432_v1  ;;  %v1328_v6 = vsel %vm1324_vm15, %v2436_v4, %v2437_v3  ;;  %2291 = vmatpush1.bf16.msra.mxu1 %v2290_v60  ;;  %1193 = vmatprep.mubr.f32.mxu1 %v2607_v0 }
 0x30e   : > { %v2292_v8 = vpack.c.bf16 %v1328_v6, %v1326_v5  ;;  %v2440_v9 = vpop.permute.xlu1 %2439  ;;  %v2445_v10 = vpop.permute.xlu0 %2444  ;;  %v747_v6 = vld [vmem:[%s3016_s5 + $0x60] sm:$0xff] }
 0x30f   : > { %v2442_v11 = vunpack.i.h.bf16 %v2440_v9  ;;  %v2441_v12 = vunpack.i.l.bf16 %v2440_v9  ;;  %v2447_v16 = vunpack.i.h.bf16 %v2445_v10  ;;  %v2446_v17 = vunpack.i.l.bf16 %v2445_v10 }
 0x310   : > { %2211 = vmatmul.mubr.msk.f32.gmra.mrb[2].mxu1 %vm392_vm0, %v742_v7  ;;  %2294 = vmatprep.subr.msk.bf16.mxu1 %vm2822_vm11, %v2292_v8 }
 0x311   : > { %v1325_v13 = vsel %vm1324_vm15, %v2441_v12, %v2431_v2  ;;  %v1327_v14 = vsel %vm1324_vm15, %v2442_v11, %v2436_v4  ;;  %1295 = vmatprep.mubr.f32.mxu1 %v2607_v0  ;;  %v1438_v27 = vsel %vm1436_vm1, %v2446_v17, %v2447_v16 }
 0x312   : > { %v2295_v19 = vpack.c.bf16 %v1327_v14, %v1325_v13  ;;  %v2455_v21 = vpop.permute.xlu1 %2454  ;;  %v2450_v22 = vpop.permute.xlu0 %2449 }
 0x313   : > { %v2457_v23 = vunpack.i.h.bf16 %v2455_v21  ;;  %v2456_v24 = vunpack.i.l.bf16 %v2455_v21  ;;  %v2452_v25 = vunpack.i.h.bf16 %v2450_v22  ;;  %v2451_v26 = vunpack.i.l.bf16 %v2450_v22  ;;  %v748_v21 = vld [vmem:[%s3016_s5 + $0x68] sm:$0xff] }
 0x314   : > { %2212 = vmatmul.mubr.msk.f32.vlgmr.msra.gmra.mrb[0].mxu1 %vm392_vm0, %v743_v18 }
 0x315   : > { %v1440_v28 = vsel %vm1436_vm1, %v2456_v24, %v2457_v23  ;;  %2297 = vmatpush1.bf16.msk.msra.mxu1 %vm2826_vm13, %v2295_v19  ;;  %1301 = vmatprep.mubr.f32.mxu1 %v2607_v0  ;;  %v1439_v38 = vsel %vm1436_vm1, %v2452_v25, %v2456_v24  ;;  %v1437_v39 = vsel %vm1436_vm1, %v2451_v26, %v2446_v17 }
 0x316   : > { %v2298_v30 = vpack.c.bf16 %v1440_v28, %v1438_v27  ;;  %v2460_v31 = vpop.permute.xlu1 %2459  ;;  %v2470_v32 = vpop.permute.xlu0 %2469  ;;  %v2301_v55 = vpack.c.bf16 %v1439_v38, %v1437_v39  ;;  %v737_v27 = vld [vmem:[%s3016_s5 + $0x10] sm:$0xff] }
 0x317   : > { %v2462_v33 = vunpack.i.h.bf16 %v2460_v31  ;;  %v2461_v35 = vunpack.i.l.bf16 %v2460_v31  ;;  %v2472_v36 = vunpack.i.h.bf16 %v2470_v32  ;;  %v2471_v37 = vunpack.i.l.bf16 %v2470_v32  ;;  %v738_v32 = vld [vmem:[%s3016_s5 + $0x18] sm:$0xff] }
 0x318   : > { %2213 = vmatmul.mubr.msk.f32.gmra.mrb[2].mxu1 %vm392_vm0, %v744_v29  ;;  %2300 = vmatprep.subr.msk.bf16.mxu1 %vm2772_vm5, %v2298_v30  ;;  %v749_v30 = vld [vmem:[%s3016_s5 + $0x70] sm:$0xff] }
 0x319   : > { %1407 = vmatprep.mubr.f32.mxu1 %v2607_v0  ;;  %v1550_v46 = vsel %vm1548_vm2, %v2461_v35, %v2462_v33  ;;  %v1552_v47 = vsel %vm1548_vm2, %v2471_v37, %v2472_v36  ;;  %v751_v33 = vld [vmem:[%s3016_s5 + $0x80] sm:$0xff] }
 0x31a   : > { %v2465_v48 = vpop.permute.xlu1 %2464  ;;  %v2475_v49 = vpop.permute.xlu0 %2474  ;;  %v2304_v54 = vpack.c.bf16 %v1552_v47, %v1550_v46 }
 0x31b   : > { %v2467_v56 = vunpack.i.h.bf16 %v2465_v48  ;;  %v2466_v57 = vunpack.i.l.bf16 %v2465_v48  ;;  %v2477_v34 = vunpack.i.h.bf16 %v2475_v49  ;;  %v2476_v58 = vunpack.i.l.bf16 %v2475_v49 }
 0x31c   : > { %2218 = vmatmul.mubr.msk.f32.vlgmr.msra.gmra.mrb[0].mxu1 %vm392_vm0, %v745_v41 }
 0x31d   : > { %2303 = vmatpush1.bf16.msk.msra.mxu1 %vm2778_vm7, %v2301_v55  ;;  %1413 = vmatprep.mubr.f32.mxu1 %v2607_v0  ;;  %v1549_v62 = vsel %vm1548_vm2, %v2466_v57, %v2461_v35  ;;  %v1551_v63 = vsel %vm1548_vm2, %v2467_v56, %v2471_v37  ;;  %v795_v40 = vsel %vm793_vm3, %v2476_v58, %v2477_v34  ;;  %v752_v37 = vld [vmem:[%s3016_s5 + $0x88] sm:$0xff] }
 0x31e   : > { %2305 = vmatprep.subr.bf16.mxu1 %v2304_v54  ;;  %v2490_v60 = vpop.permute.xlu1 %2489  ;;  %v2480_v61 = vpop.permute.xlu0 %2479  ;;  %v2306_v7 = vpack.c.bf16 %v1551_v63, %v1549_v62 }
 0x31f   : > { %v2492_v1 = vunpack.i.h.bf16 %v2490_v60  ;;  %v2491_v2 = vunpack.i.l.bf16 %v2490_v60  ;;  %v2482_v3 = vunpack.i.h.bf16 %v2480_v61  ;;  %v2481_v4 = vunpack.i.l.bf16 %v2480_v61 }
 0x320   : > { %2219 = vmatmul.mubr.msk.f32.gmra.mrb[2].mxu1 %vm392_vm0, %v746_v59 }
 0x321   : > { %1519 = vmatprep.mubr.f32.mxu1 %v2607_v0  ;;  %v797_v5 = vsel %vm793_vm3, %v2491_v2, %v2492_v1  ;;  %v1658_v16 = vsel %vm1656_vm4, %v2481_v4, %v2482_v3 }
 0x322   : > { %v2495_v8 = vpop.permute.xlu1 %2494  ;;  %v2485_v9 = vpop.permute.xlu0 %2484  ;;  %v2266_v10 = vpack.c.bf16 %v797_v5, %v795_v40  ;;  %v1809_v40 = vld [vmem:[%s3019_s8 + $0x8] sm:$0xff]  ;;  %v1810_v5 = vld [vmem:[%s3019_s8 + $0x10] sm:$0xff] }
 0x323   : > { %v2497_v11 = vunpack.i.h.bf16 %v2495_v8  ;;  %v2496_v12 = vunpack.i.l.bf16 %v2495_v8  ;;  %v2487_v13 = vunpack.i.h.bf16 %v2485_v9  ;;  %v2486_v14 = vunpack.i.l.bf16 %v2485_v9 }
 0x324   : > { %2267 = vmatprep.subr.bf16.mxu0 %v2266_v10  ;;  %2224 = vmatmul.mubr.msk.f32.vlgmr.msra.gmra.mrb[0].mxu1 %vm392_vm0, %v747_v6  ;;  %v1811_v6 = vld [vmem:[%s3019_s8 + $0x18] sm:$0xff] }
 0x325   : > { %v1660_v17 = vsel %vm1656_vm4, %v2496_v12, %v2497_v11  ;;  %v796_v18 = vsel %vm793_vm3, %v2487_v13, %v2491_v2  ;;  %v794_v19 = vsel %vm793_vm3, %v2486_v14, %v2476_v58  ;;  %2307 = vmatpush1.bf16.msra.mxu1 %v2306_v7  ;;  %1525 = vmatprep.mubr.f32.mxu1 %v2607_v0 }
 0x326   : > { %v2308_v22 = vpack.c.bf16 %v1660_v17, %v1658_v16  ;;  %v2268_v23 = vpack.c.bf16 %v796_v18, %v794_v19  ;;  %v2500_v24 = vpop.permute.xlu1 %2499 }
 0x327   : > { %v2502_v25 = vunpack.i.h.bf16 %v2500_v24  ;;  %v2501_v26 = vunpack.i.l.bf16 %v2500_v24 }
 0x328   : > { %2269 = vmatpush1.bf16.msra.mxu0 %v2268_v23  ;;  %2225 = vmatmul.mubr.msk.f32.gmra.mrb[2].mxu1 %vm392_vm0, %v748_v21 }
 0x329   : > { %v1657_v28 = vsel %vm1656_vm4, %v2501_v26, %v2481_v4  ;;  %v1659_v29 = vsel %vm1656_vm4, %v2502_v25, %v2496_v12  ;;  %2310 = vmatprep.subr.msk.bf16.mxu1 %vm2822_vm11, %v2308_v22  ;;  %1627 = vmatprep.mubr.f32.mxu1 %v2607_v0  ;;  %v1808_v4 = vld [vmem:[%s3019_s8] sm:$0xff] }
 0x32a   : > { %v2311_v31 = vpack.c.bf16 %v1659_v29, %v1657_v28 }
 0x32b   : > { %2192 = vmatmul.mubr.msk.f32.vlgmr.msra.gmra.mrb[12].mxu0 %vm392_vm0, %v737_v27 }
 0x32c   : > { %2226 = vmatmul.mubr.msk.f32.vlgmr.msra.gmra.mrb[0].mxu1 %vm392_vm0, %v749_v30  ;;  %878 = vmatprep.mubr.f32.mxu0 %v2607_v0 }
 0x32d   : > { %2313 = vmatpush1.bf16.msk.msra.mxu1 %vm2826_vm13, %v2311_v31  ;;  %1633 = vmatprep.mubr.f32.mxu1 %v2607_v0 }
 0x32f   : > { %2193 = vmatmul.mubr.msk.f32.gmra.mrb[14].mxu0 %vm392_vm0, %v738_v32 }
 0x330   : > { %2227 = vmatmul.mubr.msk.f32.gmra.mrb[2].mxu1 %vm392_vm0, %v750_v15  ;;  %1888 = vmatprep.mubr.f32.mxu0 %v2607_v0 }
 0x331   : > { %1739 = vmatprep.mubr.f32.mxu1 %v2607_v0 }
 0x333   : > { %v385_v20 = vpop.permute.xlu0 %384 }
 0x334   : > { %v484_v35 = vadd.f32 %v2743_v50, %v385_v20  ;;  %v486_v36 = vadd.f32 %v2745_v51, %v385_v20  ;;  %2232 = vmatmul.mubr.msk.f32.vlgmr.msra.gmra.mrb[0].mxu1 %vm392_vm0, %v751_v33 }
 0x335   : > { %1745 = vmatprep.mubr.f32.mxu1 %v2607_v0 }
 0x336   : > { %v2182_v38 = vmul.f32 -1.442695, %v484_v35  ;;  %v2183_v39 = vmul.f32 -1.442695, %v486_v36 }
 0x337   : > { %v390_v41 = vpop.permute.xlu1 %389  ;;  %v1761_v14 = vpop.permute.xlu0 %1760 }
 0x338   : > { %2535 = vpow2.f32 %v2182_v38  ;;  %v490_v46 = vadd.f32 %v2747_v52, %v390_v41  ;;  %v492_v47 = vadd.f32 %v2749_v53, %v390_v41  ;;  %2233 = vmatmul.mubr.msk.f32.gmra.mrb[2].mxu1 %vm392_vm0, %v752_v37 }
 0x339   : > { %2537 = vpow2.f32 %v2183_v39 }
 0x33a   : > { %v2184_v50 = vmul.f32 -1.442695, %v490_v46  ;;  %v2185_v51 = vmul.f32 -1.442695, %v492_v47 }
 0x33b   : > { %v1766_v24 = vpop.permute.xlu1 %1765 }
 0x33c   : > { %2539 = vpow2.f32 %v2184_v50 }
 0x33d   : > { %2541 = vpow2.f32 %v2185_v51 }
 0x342   : > { %v2536_v48 = vpop.eup %2535 }
 0x343   : > { %v2538_v49 = vpop.eup %2537  ;;  %v522_v54 = vadd.f32 1.0, %v2536_v48 }
 0x344   : > { %v523_v55 = vadd.f32 1.0, %v2538_v49 }
 0x345   : > { %2543 = vrcp.f32 %v522_v54 }
 0x346   : > { %v2540_v56 = vpop.eup %2539  ;;  %2545 = vrcp.f32 %v523_v55 }
 0x347   : > { %v2542_v57 = vpop.eup %2541  ;;  %v524_v34 = vadd.f32 1.0, %v2540_v56 }
 0x348   : > { %v525_v58 = vadd.f32 1.0, %v2542_v57 }
 0x349   : > { %2547 = vrcp.f32 %v524_v34 }
 0x34a   : > { %2549 = vrcp.f32 %v525_v58  ;;  %v1804_v58 = vld [vmem:[%s3018_s7] sm:$0xff] }
 0x34f   : > { %v2544_v52 = vpop.eup %2543 }
 0x350   : > { %v2546_v53 = vpop.eup %2545  ;;  %v546_v61 = vmul.f32 %v2544_v52, %v484_v35 }
 0x351   : > { %v547_v63 = vmul.f32 %v2546_v53, %v486_v36 }
 0x353   : > { %v2548_v59 = vpop.eup %2547 }
 0x354   : > { %v2550_v60 = vpop.eup %2549  ;;  %v548_v62 = vmul.f32 %v2548_v59, %v490_v46 }
 0x355   : > { %v549_v1 = vmul.f32 %v2550_v60, %v492_v47 }
 0x356   : > { %v2316_v2 = vpack.c.bf16 %v548_v62, %v546_v61  ;;  %v2026_v62 = vpop.permute.xlu1 %2025 }
 0x357   : > { %v2314_v3 = vpack.c.bf16 %v549_v1, %v547_v63 }
 0x359   : > { %2315 = vmatprep.subr.bf16.mxu0 %v2314_v3 }
 0x35a   : > { %2317 = vmatpush1.bf16.msra.mxu0 %v2316_v2 }
 0x35d   : > { %2238 = vmatmul.mubr.msk.f32.vlgmr.msra.gmra.mrb[16].mxu0 %vm392_vm0, %v1808_v4 }
 0x35e   : > { %1894 = vmatprep.mubr.f32.mxu0 %v2607_v0 }
 0x361   : > { %2239 = vmatmul.mubr.msk.f32.gmra.mrb[18].mxu0 %vm392_vm0, %v1809_v40 }
 0x362   : > { %1900 = vmatprep.mubr.f32.mxu0 %v2607_v0 }
 0x365   : > { %2240 = vmatmul.mubr.msk.f32.gmra.mrb[20].mxu0 %vm392_vm0, %v1810_v5 }
 0x366   : > { %1906 = vmatprep.mubr.f32.mxu0 %v2607_v0 }
 0x369   : > { %2241 = vmatmul.mubr.msk.f32.gmra.mrb[22].mxu0 %vm392_vm0, %v1811_v6 }
 0x36a   : > { %1989 = vmatprep.mubr.f32.mxu0 %v2607_v0 }
 0x3fe   : > { %v874_v7 = vpop.f32.mrb[12].mxu0 }
 0x3ff   : > { %v876_v8 = vpop.f32.mrb[13].mxu0 }
 0x402   : > { %v880_v9 = vpop.f32.mrb[14].mxu0 }
 0x403   : > { %v882_v10 = vpop.f32.mrb[15].mxu0 }
 0x407   : > { %v1741_v11 = vpop.f32.mrb[0].mxu1 }
 0x408   : > { %v2322_v12 = vadd.f32 %v1741_v11, %v874_v7  ;;  %v1743_v13 = vpop.f32.mrb[1].mxu1  ;;  %v2036_v11 = vpop.permute.xlu1 %2035 }
 0x409   : > { %v2323_v16 = vadd.f32 %v1743_v13, %v876_v8 }
 0x40a   : > { %v1768_v17 = vadd.f32 %v2322_v12, %v1761_v14 }
 0x40b   : > { %v1769_v18 = vadd.f32 %v2323_v16, %v1761_v14  ;;  %v1747_v19 = vpop.f32.mrb[2].mxu1 }
 0x40c   : > { %v2234_v21 = vmul.f32 -1.442695, %v1768_v17  ;;  %v2324_v22 = vadd.f32 %v1747_v19, %v880_v9  ;;  %v1749_v23 = vpop.f32.mrb[3].mxu1 }
 0x40d   : > { %v2235_v25 = vmul.f32 -1.442695, %v1769_v18  ;;  %v2325_v26 = vadd.f32 %v1749_v23, %v882_v10 }
 0x40e   : > { %2551 = vpow2.f32 %v2234_v21  ;;  %v1770_v27 = vadd.f32 %v2324_v22, %v1766_v24 }
 0x40f   : > { %2553 = vpow2.f32 %v2235_v25  ;;  %v1771_v28 = vadd.f32 %v2325_v26, %v1766_v24 }
 0x410   : > { %v2236_v29 = vmul.f32 -1.442695, %v1770_v27 }
 0x411   : > { %v2237_v30 = vmul.f32 -1.442695, %v1771_v28 }
 0x412   : > { %2555 = vpow2.f32 %v2236_v29 }
 0x413   : > { %2557 = vpow2.f32 %v2237_v30 }
 0x418   : > { %v2552_v31 = vpop.eup %2551 }
 0x419   : > { %v2554_v32 = vpop.eup %2553  ;;  %v1784_v15 = vadd.f32 1.0, %v2552_v31 }
 0x41a   : > { %v1785_v33 = vadd.f32 1.0, %v2554_v32 }
 0x41b   : > { %2559 = vrcp.f32 %v1784_v15 }
 0x41c   : > { %v2556_v20 = vpop.eup %2555  ;;  %2561 = vrcp.f32 %v1785_v33 }
 0x41d   : > { %v2558_v35 = vpop.eup %2557  ;;  %v1786_v36 = vadd.f32 1.0, %v2556_v20 }
 0x41e   : > { %v1787_v37 = vadd.f32 1.0, %v2558_v35 }
 0x41f   : > { %2563 = vrcp.f32 %v1786_v36 }
 0x420   : > { %2565 = vrcp.f32 %v1787_v37 }
 0x425   : > { %v2560_v38 = vpop.eup %2559 }
 0x426   : > { %v2562_v39 = vpop.eup %2561  ;;  %v1796_v41 = vmul.f32 %v2560_v38, %v1768_v17 }
 0x427   : > { %v1797_v47 = vmul.f32 %v2562_v39, %v1769_v18 }
 0x428   : > { %v1800_v49 = vadd.f32 %v1796_v41, %v2727_v45  ;;  %v2021_v45 = vpop.permute.xlu0 %2020 }
 0x429   : > { %v2564_v46 = vpop.eup %2563  ;;  %v1801_v55 = vadd.f32 %v1797_v47, %v2723_v43  ;;  %v1806_v43 = vld [vmem:[%s3018_s7 + $0x10] sm:$0xff] }
 0x42a   : > { %v2566_v50 = vpop.eup %2565  ;;  %v1798_v51 = vmul.f32 %v2564_v46, %v1770_v27 }
 0x42b   : > { %v1799_v48 = vmul.f32 %v2566_v50, %v1771_v28 }
 0x42c   : > { %v1802_v54 = vadd.f32 %v1798_v51, %v2721_v42  ;;  %v1805_v42 = vld [vmem:[%s3018_s7 + $0x8] sm:$0xff]  ;;  %v2031_v40 = vpop.permute.xlu0 %2030 }
 0x42d   : > { %v1803_v56 = vadd.f32 %v1799_v48, %v2725_v44  ;;  %v1807_v44 = vld [vmem:[%s3018_s7 + $0x18] sm:$0xff] }
 0x42e   : > { %v2320_v57 = vpack.c.bf16 %v1802_v54, %v1800_v49 }
 0x42f   : > { %v2318_v34 = vpack.c.bf16 %v1803_v56, %v1801_v55 }
 0x431   : > { %2319 = vmatprep.subr.bf16.mxu0 %v2318_v34 }
 0x432   : > { %2321 = vmatpush1.bf16.msra.mxu0 %v2320_v57 }
 0x435   : > { %2242 = vmatmul.mubr.msk.f32.vlgmr.msra.gmra.mrb[16].mxu0 %vm392_vm0, %v1804_v58 }
 0x436   : > { %1995 = vmatprep.mubr.f32.mxu0 %v2607_v0 }
 0x439   : > { %2243 = vmatmul.mubr.msk.f32.gmra.mrb[18].mxu0 %vm392_vm0, %v1805_v42 }
 0x43a   : > { %2001 = vmatprep.mubr.f32.mxu0 %v2607_v0 }
 0x43d   : > { %2244 = vmatmul.mubr.msk.f32.gmra.mrb[20].mxu0 %vm392_vm0, %v1806_v43 }
 0x43e   : > { %2007 = vmatprep.mubr.f32.mxu0 %v2607_v0 }
 0x441   : > { %2245 = vmatmul.mubr.msk.f32.gmra.mrb[22].mxu0 %vm392_vm0, %v1807_v44 }
 0x508   : > { %v1991_v52 = vpop.f32.mrb[16].mxu0 }
 0x509   : > { %v2038_v53 = vadd.f32 %v2021_v45, %v1991_v52  ;;  %v1993_v59 = vpop.f32.mrb[17].mxu0 }
 0x50a   : > { %v2039_v60 = vadd.f32 %v2021_v45, %v1993_v59 }
 0x50b   : > { %v2246_v61 = vmul.f32 -1.442695, %v2038_v53 }
 0x50c   : > { %v2247_v63 = vmul.f32 -1.442695, %v2039_v60  ;;  %v1997_v1 = vpop.f32.mrb[18].mxu0 }
 0x50d   : > { %2567 = vpow2.f32 %v2246_v61  ;;  %v2040_v2 = vadd.f32 %v2026_v62, %v1997_v1  ;;  %v1999_v3 = vpop.f32.mrb[19].mxu0 }
 0x50e   : > { %2569 = vpow2.f32 %v2247_v63  ;;  %v2041_v0 = vadd.f32 %v2026_v62, %v1999_v3 }
 0x50f   : > { %v2248_v4 = vmul.f32 -1.442695, %v2040_v2 }
 0x510   : > { %v2249_v5 = vmul.f32 -1.442695, %v2041_v0  ;;  %v2003_v6 = vpop.f32.mrb[20].mxu0 }
 0x511   : > { %2571 = vpow2.f32 %v2248_v4  ;;  %v2042_v7 = vadd.f32 %v2031_v40, %v2003_v6  ;;  %v2005_v8 = vpop.f32.mrb[21].mxu0 }
 0x512   : > { %2573 = vpow2.f32 %v2249_v5  ;;  %v2043_v9 = vadd.f32 %v2031_v40, %v2005_v8 }
 0x513   : > { %v2250_v10 = vmul.f32 -1.442695, %v2042_v7 }
 0x514   : > { %v2251_v12 = vmul.f32 -1.442695, %v2043_v9  ;;  %v2009_v13 = vpop.f32.mrb[22].mxu0 }
 0x515   : > { %2575 = vpow2.f32 %v2250_v10  ;;  %v2044_v14 = vadd.f32 %v2036_v11, %v2009_v13  ;;  %v2011_v16 = vpop.f32.mrb[23].mxu0 }
 0x516   : > { %2577 = vpow2.f32 %v2251_v12  ;;  %v2045_v17 = vadd.f32 %v2036_v11, %v2011_v16 }
 0x517   : > { %v2568_v18 = vpop.eup %2567  ;;  %v2252_v19 = vmul.f32 -1.442695, %v2044_v14 }
 0x518   : > { %v2570_v21 = vpop.eup %2569  ;;  %v2070_v22 = vadd.f32 1.0, %v2568_v18  ;;  %v2253_v23 = vmul.f32 -1.442695, %v2045_v17 }
 0x519   : > { %v2071_v24 = vadd.f32 1.0, %v2570_v21  ;;  %2579 = vpow2.f32 %v2252_v19 }
 0x51a   : > { %2581 = vrcp.f32 %v2070_v22 }
 0x51b   : > { %v2572_v25 = vpop.eup %2571  ;;  %2583 = vrcp.f32 %v2071_v24 }
 0x51c   : > { %v2574_v26 = vpop.eup %2573  ;;  %v2072_v27 = vadd.f32 1.0, %v2572_v25  ;;  %2585 = vpow2.f32 %v2253_v23 }
 0x51d   : > { %v2073_v28 = vadd.f32 1.0, %v2574_v26 }
 0x51e   : > { %2587 = vrcp.f32 %v2072_v27 }
 0x51f   : > { %v2576_v29 = vpop.eup %2575  ;;  %2589 = vrcp.f32 %v2073_v28 }
 0x520   : > { %v2578_v30 = vpop.eup %2577  ;;  %v2074_v31 = vadd.f32 1.0, %v2576_v29 }
 0x521   : > { %v2075_v32 = vadd.f32 1.0, %v2578_v30 }
 0x522   : > { %2591 = vrcp.f32 %v2074_v31 }
 0x523   : > { %v2580_v15 = vpop.eup %2579  ;;  %2593 = vrcp.f32 %v2075_v32 }
 0x524   : > { %v2582_v33 = vpop.eup %2581  ;;  %v2076_v20 = vadd.f32 1.0, %v2580_v15 }
 0x525   : > { %v2584_v35 = vpop.eup %2583  ;;  %v2094_v36 = vmul.f32 %v2582_v33, %v2038_v53 }
 0x526   : > { %v2586_v37 = vpop.eup %2585  ;;  %v2095_v38 = vmul.f32 %v2584_v35, %v2039_v60  ;;  %2595 = vrcp.f32 %v2076_v20 }
 0x527   : > { %2102 = vst [vmem:[%s359_s29] sm:$0xff] %v2094_v36  ;;  %v2077_v39 = vadd.f32 1.0, %v2586_v37 }
 0x528   : > { %v2588_v41 = vpop.eup %2587  ;;  %2103 = vst [vmem:[%s359_s29 + $0x8] sm:$0xff] %v2095_v38 }
 0x529   : > { %v2590_v46 = vpop.eup %2589  ;;  %v2096_v47 = vmul.f32 %v2588_v41, %v2040_v2  ;;  %2597 = vrcp.f32 %v2077_v39 }
 0x52a   : > { %v2097_v50 = vmul.f32 %v2590_v46, %v2041_v0 }
 0x52b   : > { %2104 = vst [vmem:[%s359_s29 + $0x10] sm:$0xff] %v2096_v47 }
 0x52c   : > { %v2592_v51 = vpop.eup %2591  ;;  %2105 = vst [vmem:[%s359_s29 + $0x18] sm:$0xff] %v2097_v50 }
 0x52d   : > { %v2594_v48 = vpop.eup %2593  ;;  %v2098_v49 = vmul.f32 %v2592_v51, %v2042_v7 }
 0x52e   : > { %v2099_v54 = vmul.f32 %v2594_v48, %v2043_v9 }
 0x52f   : > { %2106 = vst [vmem:[%s359_s29 + $0x20] sm:$0xff] %v2098_v49 }
 0x530   : > { %v2596_v55 = vpop.eup %2595  ;;  %2107 = vst [vmem:[%s359_s29 + $0x28] sm:$0xff] %v2099_v54 }
 0x531   : > { %v2100_v56 = vmul.f32 %v2596_v55, %v2044_v14 }
 0x533   : > { %v2598_v57 = vpop.eup %2597  ;;  %2108 = vst [vmem:[%s359_s29 + $0x30] sm:$0xff] %v2100_v56 }
 0x534   : > { %v2101_v34 = vmul.f32 %v2598_v57, %v2045_v17 }
 0x536   : > { %2109 = vst [vmem:[%s359_s29 + $0x38] sm:$0xff] %v2101_v34 }
 0x537 PF: > { %s20_s13 = sadd.s32 1, %s2605_s13  }
 0x538   : > { %p17_p4 = scmp.ge.s32.totalorder %s20_s13, 4  }
 0x53a   :  { %19 = sbr.rel (!%p17_p4) target bundleno = 1 (0x1), region = 90 }

</bundles_post_ra>
